<compile_context>
chip_gen: v6e
topology: v6e:2x2x1
jax: 0.10.0
libtpu: 0.0.40
codegen_flags: <defaults>
</compile_context>

<pallas_src>
import functools
import math

import numpy as np
import jax
import jax.numpy as jnp
from jax import lax
from jax.experimental import pallas as pl
from jax.experimental.pallas import tpu as pltpu


def _round_up(x, m):
    return ((x + m - 1) // m) * m


# ---------------------------------------------------------------------------------------
# Fused kernel. One grid step = (i = P-tile index, j = PCT order index).
#   n_ref   : SMEM (num_nl,) f32          scalar-prefetched radial orders n (l drops out)
#   r2_ref  : VMEM (KH, KW*W) f32         lane-expanded r^2 grid: r2[u, v*W + w] = r[u,v]^2
#   x_ref   : VMEM (TP, H, W) f32         raw image tile (no host-side padding/expansion)
#   out_ref : VMEM (1, TP, H, W) f32      response block for (nl = j, P-tile = i)
#   xs_ref  : VMEM (TP, Hp_alloc, KW*W)   scratch: zero-padded column-expanded slab
#             xs[tp, hp + OFF - pb, v*W + w] = x_pad[tp, hp, v + w]
# ---------------------------------------------------------------------------------------
def _pct_fused_kernel(n_ref, r2_ref, x_ref, out_ref, xs_ref, *,
                      H, W, KH, KW, pb, pe, OFF, HB):
    j = pl.program_id(1)
    TP = x_ref.shape[0]
    KWW = KW * W
    Hp_alloc = xs_ref.shape[1]
    OFFMB = OFF - pb                       # slab row holding padded-image row 0

    # ---- (1) build the padded + column-expanded slab once per P tile (reused over nl) --
    @pl.when(j == 0)
    def _build_slab():
        x = x_ref[...]                                               # (TP, H, W)
        parts = []
        if pb:
            parts.append(jnp.zeros((TP, H, pb), jnp.float32))
        parts.append(x)
        if pe:
            parts.append(jnp.zeros((TP, H, pe), jnp.float32))
        xc = jnp.concatenate(parts, axis=-1)                         # (TP, H, W + KW - 1)
        # column expansion: lane L = v*W + w  <-  padded column v + w
        row = jnp.concatenate([xc[:, :, v:v + W] for v in range(KW)], axis=-1)
        xs_ref[:, OFF:OFF + H, :] = row                              # sublane/lane-aligned store
        if OFF > 0:                                                  # top halo rows (+ shim)
            xs_ref[:, 0:OFF, :] = jnp.zeros((TP, OFF, KWW), jnp.float32)
        if Hp_alloc > OFF + H:                                       # bottom halo rows
            xs_ref[:, OFF + H:, :] = jnp.zeros(
                (TP, Hp_alloc - OFF - H, KWW), jnp.float32)

    # ---- (2) per-nl PCT kernel magnitudes, fused (mask folded in via where) ------------
    n = n_ref[j]                                                     # scalar from SMEM
    r2 = r2_ref[...]                                                 # (KH, KWW)
    wk = jnp.where(r2 <= 1.0,
                   jnp.abs(jnp.cos(jnp.float32(math.pi) * n * r2)),
                   jnp.float32(0.0))                                 # (KH, KWW)

    # ---- (3) taps: full-lane VPU FMAs against the expanded slab ------------------------
    for h0 in range(0, H, HB):                                       # single iteration for demo
        hcur = min(HB, H - h0)
        acc = jnp.zeros((TP, hcur, KWW), jnp.float32)
        for u in range(KH):
            # The (1,1,KWW) weight-row broadcast is re-emitted per u on purpose:
            # materialising all KH broadcast rows up-front would pin ~2*KH vregs and spill.
            w_row = wk[u, :][None, None, :]
            xslab = xs_ref[:, h0 + u + OFFMB:h0 + u + OFFMB + hcur, :]
            acc = acc + w_row * xslab

        # ---- (4) fold the KW column segments (W lanes each) down to W lanes ------------
        t = acc
        n_seg = KW
        # (a) halve with 128-lane-aligned slices while possible
        while n_seg % 2 == 0 and ((n_seg // 2) * W) % 128 == 0:
            half = (n_seg // 2) * W
            t = t[:, :, :half] + t[:, :, half:]
            n_seg //= 2
        width = t.shape[-1]
        # (b) below 128-lane alignment: fold on the XLU via pltpu.roll (adds stay full-vreg)
        if n_seg > 1 and width % 128 == 0:
            while n_seg % 2 == 0:
                half = (n_seg // 2) * W
                t = t + pltpu.roll(t, shift=width - half, axis=2)
                n_seg //= 2
        # (c) generic remainder (odd KW factors): plain slice adds
        if n_seg > 1:
            r = t[:, :, 0:W]
            for v in range(1, n_seg):
                r = r + t[:, :, v * W:(v + 1) * W]
            t = r
        elif t.shape[-1] > W:
            t = t[:, :, 0:W]

        out_ref[0, :, h0:h0 + hcur, :] = t


# ---------------------------------------------------------------------------------------
# Wrapper reproducing PCTKernelLayer.forward(image, list_nl)
# ---------------------------------------------------------------------------------------
@functools.partial(jax.jit, static_argnames=("list_nl", "image_size"))
def _pct_forward(image, list_nl, image_size):
    B, C, H, W = image.shape
    assert C == 3, "PCTKernelLayer uses groups=3 with the kernel repeated per channel"
    KH = KW = image_size
    num_nl = len(list_nl)
    KWW = KW * W
    P = B * C

    # torch padding='same' (asymmetric for even kernels): left=(k-1)//2, right=ceil((k-1)/2)
    pad_total = KH - 1
    pb = pad_total // 2
    pe = pad_total - pb

    # slab row geometry: padded-image interior starts at a sublane-aligned row OFF >= pb
    OFF = _round_up(pb, 8)
    Hp_alloc = max(8, _round_up(OFF + H + pe, 8))

    # --- host-side (numpy) constants: polar grid, lane-expanded r^2, n values -----------
    idx = np.linspace(1.0, float(image_size), image_size, dtype=np.float32)
    c = (1.0 + image_size) / 2.0
    xn = ((idx - c) / (c - 1.0)).astype(np.float32)
    R2 = xn[:, None] ** 2 + xn[None, :] ** 2                         # (KH, KW)
    r2rep = np.repeat(R2.astype(np.float32), W, axis=1)              # (KH, KW*W)
    n_vals = np.asarray([float(n) for (n, _l) in list_nl], np.float32)

    x_flat = image.reshape(P, H, W).astype(jnp.float32)              # free reshape, no pad/stack

    # --- tiling: vreg budget counts acc + x-slab + product (3 live (TP,HB,KWW) tiles) ---
    lane_tiles = -(-KWW // 128)
    HB = H
    if 3 * (-(-HB // 8)) * lane_tiles > 32 and H > 8:
        HB = 8
    vregs_tp1 = 3 * (-(-HB // 8)) * lane_tiles
    tp_cap = max(1, 32 // vregs_tp1)
    if P >= 2:
        tp_cap = min(tp_cap, max(1, P // 2))      # guarantee >= 2 P-tiles (megacore/pipelining)
    TP = 1
    for d in range(1, P + 1):                     # largest divisor of P within the cap
        if P % d == 0 and d <= tp_cap:
            TP = d
    n_ptiles = P // TP

    kernel = functools.partial(
        _pct_fused_kernel, H=H, W=W, KH=KH, KW=KW, pb=pb, pe=pe, OFF=OFF, HB=HB)

    # VMEM per core: double-buffered blocks (x ~16 KB, r2 ~16 KB, out ~16 KB) + slab scratch
    # (TP*Hp_alloc*KWW*4 ~ 64 KB for the demo) -- far below v7x's 64 MiB physical VMEM.
    grid_spec = pltpu.PrefetchScalarGridSpec(
        num_scalar_prefetch=1,
        grid=(n_ptiles, num_nl),
        in_specs=[
            pl.BlockSpec((KH, KWW), lambda i, j, n_sref: (0, 0)),     # r^2 grid, VMEM resident
            pl.BlockSpec((TP, H, W), lambda i, j, n_sref: (i, 0, 0)),  # raw image tile
        ],
        out_specs=pl.BlockSpec((1, TP, H, W), lambda i, j, n_sref: (j, i, 0, 0)),
        scratch_shapes=[pltpu.VMEM((TP, Hp_alloc, KWW), jnp.float32)],
    )

    out = pl.pallas_call(
        kernel,
        out_shape=jax.ShapeDtypeStruct((num_nl, P, H, W), jnp.float32),
        grid_spec=grid_spec,
        compiler_params=pltpu.CompilerParams(
            dimension_semantics=("parallel", "arbitrary"),
            vmem_limit_bytes=32 * 1024 * 1024,
        ),
    )(jnp.asarray(n_vals), jnp.asarray(r2rep), x_flat)

    out = out.reshape(num_nl, B, C, H, W)
    return tuple(out[i] for i in range(num_nl))


def pct_kernel_layer(image, list_nl, image_size):
    """Matches PCTKernelLayer(image_size).forward(image, list_nl):
    returns a list of (B, 3, H, W) responses, one per (n, l) in list_nl."""
    key = tuple((int(n), int(l)) for (n, l) in list_nl)
    return list(_pct_forward(image, key, int(image_size)))


# ---------------------------------------------------------------------------------------
# Demo / correctness check
# ---------------------------------------------------------------------------------------
if __name__ == "__main__":
    B, C, H, W = 2, 3, 16, 16
    image_size = 16
    list_nl = [(0, 1), (1, 1), (2, 2), (3, 0)]

    key = jax.random.PRNGKey(0)
    image = jax.random.normal(key, (B, C, H, W), dtype=jnp.float32)

    responses = pct_kernel_layer(image, list_nl, image_size)
    responses = jax.block_until_ready(responses)

    # Pure-JAX reference. The torch module convolves with |kernel| (it takes the magnitude
    # of the complex kernel BEFORE the conv), and |mask*cos(.) * mask*exp(-i*l*th)| =
    # mask*|cos(pi*n*R^2)| since mask is {0,1} and |exp| == 1; padding='same' in torch is
    # asymmetric for even kernels (left=(k-1)//2, right=ceil((k-1)/2)).
    idxr = jnp.linspace(1.0, float(image_size), image_size, dtype=jnp.float32)
    cr = (1.0 + image_size) / 2.0
    xr = (idxr - cr) / (cr - 1.0)
    R2r = xr[:, None] ** 2 + xr[None, :] ** 2
    maskr = (jnp.sqrt(R2r) <= 1.0).astype(jnp.float32)
    pad_total = image_size - 1
    pbr, per = pad_total // 2, pad_total - pad_total // 2

    for i, (n, l) in enumerate(list_nl):
        mag = maskr * jnp.abs(jnp.cos(math.pi * n * R2r))
        kern = jnp.broadcast_to(mag[None, None], (3, 1, image_size, image_size))
        ref = lax.conv_general_dilated(
            image, kern, window_strides=(1, 1),
            padding=((pbr, per), (pbr, per)),
            dimension_numbers=("NCHW", "OIHW", "NCHW"),
            feature_group_count=3)
        err = float(jnp.max(jnp.abs(ref - responses[i])))
        assert responses[i].shape == (B, C, H, W)
        assert err < 3e-3, f"mismatch for nl={(n, l)}: max abs err {err}"

    print("KERNEL_OK")
</pallas_src>

<mosaic_0001>
module attributes {stable_mosaic.version = 11 : i64} {
  func.func @_pct_fused_kernel(%arg0: i32, %arg1: i32, %arg2: memref<4xf32, #tpu.memory_space<smem>>, %arg3: memref<16x256xf32, #tpu.memory_space<vmem>>, %arg4: memref<2x16x16xf32, #tpu.memory_space<vmem>>, %arg5: memref<1x2x16x16xf32, #tpu.memory_space<vmem>>, %arg6: memref<2x32x256xf32, #tpu.memory_space<vmem>>) attributes {dimension_semantics = [#tpu.dimension_semantics<parallel>, #tpu.dimension_semantics<arbitrary>], iteration_bounds = array<i64: 3, 4>, scalar_prefetch = 1 : i64, scratch_operands = 1 : i64, tpu.core_type = #tpu.core_type<tc>, window_params = [{pipeline_mode = #tpu.pipeline_mode<synchronous>, transform_indices = @transform_0, window_bounds = array<i64: 16, 256>}, {transform_indices = @transform_1, window_bounds = array<i64: 2, 16, 16>}, {transform_indices = @transform_2, window_bounds = array<i64: 1, 2, 16, 16>}]} {
    %c0_i32 = arith.constant 0 : i32
    %0 = arith.cmpi eq, %arg1, %c0_i32 : i32
    %1 = arith.extui %0 : i1 to i32
    %c0_i32_0 = arith.constant 0 : i32
    %2 = arith.cmpi ne, %1, %c0_i32_0 : i32
    scf.if %2 {
      %c0_41 = arith.constant 0 : index
      %c0_42 = arith.constant 0 : index
      %c0_43 = arith.constant 0 : index
      %141 = vector.load %arg4[%c0_41, %c0_42, %c0_43] : memref<2x16x16xf32, #tpu.memory_space<vmem>>, vector<2x16x16xf32>
      %cst_44 = arith.constant 0.000000e+00 : f32
      %142 = vector.broadcast %cst_44 : f32 to vector<2x16x7xf32>
      %cst_45 = arith.constant 0.000000e+00 : f32
      %143 = vector.broadcast %cst_45 : f32 to vector<2x16x8xf32>
      %144 = tpu.concatenate %142, %141, %143 in 2 : vector<2x16x7xf32>, vector<2x16x16xf32>, vector<2x16x8xf32> -> vector<2x16x31xf32>
      %145 = vector.extract_strided_slice %144 {offsets = [0, 0, 0], sizes = [2, 16, 16], strides = [1, 1, 1]} : vector<2x16x31xf32> to vector<2x16x16xf32>
      %146 = vector.extract_strided_slice %144 {offsets = [0, 0, 1], sizes = [2, 16, 16], strides = [1, 1, 1]} : vector<2x16x31xf32> to vector<2x16x16xf32>
      %147 = vector.extract_strided_slice %144 {offsets = [0, 0, 2], sizes = [2, 16, 16], strides = [1, 1, 1]} : vector<2x16x31xf32> to vector<2x16x16xf32>
      %148 = vector.extract_strided_slice %144 {offsets = [0, 0, 3], sizes = [2, 16, 16], strides = [1, 1, 1]} : vector<2x16x31xf32> to vector<2x16x16xf32>
      %149 = vector.extract_strided_slice %144 {offsets = [0, 0, 4], sizes = [2, 16, 16], strides = [1, 1, 1]} : vector<2x16x31xf32> to vector<2x16x16xf32>
      %150 = vector.extract_strided_slice %144 {offsets = [0, 0, 5], sizes = [2, 16, 16], strides = [1, 1, 1]} : vector<2x16x31xf32> to vector<2x16x16xf32>
      %151 = vector.extract_strided_slice %144 {offsets = [0, 0, 6], sizes = [2, 16, 16], strides = [1, 1, 1]} : vector<2x16x31xf32> to vector<2x16x16xf32>
      %152 = vector.extract_strided_slice %144 {offsets = [0, 0, 7], sizes = [2, 16, 16], strides = [1, 1, 1]} : vector<2x16x31xf32> to vector<2x16x16xf32>
      %153 = vector.extract_strided_slice %144 {offsets = [0, 0, 8], sizes = [2, 16, 16], strides = [1, 1, 1]} : vector<2x16x31xf32> to vector<2x16x16xf32>
      %154 = vector.extract_strided_slice %144 {offsets = [0, 0, 9], sizes = [2, 16, 16], strides = [1, 1, 1]} : vector<2x16x31xf32> to vector<2x16x16xf32>
      %155 = vector.extract_strided_slice %144 {offsets = [0, 0, 10], sizes = [2, 16, 16], strides = [1, 1, 1]} : vector<2x16x31xf32> to vector<2x16x16xf32>
      %156 = vector.extract_strided_slice %144 {offsets = [0, 0, 11], sizes = [2, 16, 16], strides = [1, 1, 1]} : vector<2x16x31xf32> to vector<2x16x16xf32>
      %157 = vector.extract_strided_slice %144 {offsets = [0, 0, 12], sizes = [2, 16, 16], strides = [1, 1, 1]} : vector<2x16x31xf32> to vector<2x16x16xf32>
      %158 = vector.extract_strided_slice %144 {offsets = [0, 0, 13], sizes = [2, 16, 16], strides = [1, 1, 1]} : vector<2x16x31xf32> to vector<2x16x16xf32>
      %159 = vector.extract_strided_slice %144 {offsets = [0, 0, 14], sizes = [2, 16, 16], strides = [1, 1, 1]} : vector<2x16x31xf32> to vector<2x16x16xf32>
      %160 = vector.extract_strided_slice %144 {offsets = [0, 0, 15], sizes = [2, 16, 16], strides = [1, 1, 1]} : vector<2x16x31xf32> to vector<2x16x16xf32>
      %161 = tpu.concatenate %145, %146, %147, %148, %149, %150, %151, %152, %153, %154, %155, %156, %157, %158, %159, %160 in 2 : vector<2x16x16xf32>, vector<2x16x16xf32>, vector<2x16x16xf32>, vector<2x16x16xf32>, vector<2x16x16xf32>, vector<2x16x16xf32>, vector<2x16x16xf32>, vector<2x16x16xf32>, vector<2x16x16xf32>, vector<2x16x16xf32>, vector<2x16x16xf32>, vector<2x16x16xf32>, vector<2x16x16xf32>, vector<2x16x16xf32>, vector<2x16x16xf32>, vector<2x16x16xf32> -> vector<2x16x256xf32>
      %c0_46 = arith.constant 0 : index
      %c8_47 = arith.constant 8 : index
      %c0_48 = arith.constant 0 : index
      %162 = vector.load %arg6[%c0_46, %c8_47, %c0_48] : memref<2x32x256xf32, #tpu.memory_space<vmem>>, vector<2x16x256xf32>
      tpu.vector_store %arg6[%c0_46, %c8_47, %c0_48], %161 {strides = array<i32>} : memref<2x32x256xf32, #tpu.memory_space<vmem>>, vector<2x16x256xf32>,
      %cst_49 = arith.constant 0.000000e+00 : f32
      %163 = vector.broadcast %cst_49 : f32 to vector<2x8x256xf32>
      %c0_50 = arith.constant 0 : index
      %c0_51 = arith.constant 0 : index
      %c0_52 = arith.constant 0 : index
      %164 = vector.load %arg6[%c0_50, %c0_51, %c0_52] : memref<2x32x256xf32, #tpu.memory_space<vmem>>, vector<2x8x256xf32>
      tpu.vector_store %arg6[%c0_50, %c0_51, %c0_52], %163 {strides = array<i32>} : memref<2x32x256xf32, #tpu.memory_space<vmem>>, vector<2x8x256xf32>,
      %cst_53 = arith.constant 0.000000e+00 : f32
      %165 = vector.broadcast %cst_53 : f32 to vector<2x8x256xf32>
      %c0_54 = arith.constant 0 : index
      %c24 = arith.constant 24 : index
      %c0_55 = arith.constant 0 : index
      %166 = vector.load %arg6[%c0_54, %c24, %c0_55] : memref<2x32x256xf32, #tpu.memory_space<vmem>>, vector<2x8x256xf32>
      tpu.vector_store %arg6[%c0_54, %c24, %c0_55], %165 {strides = array<i32>} : memref<2x32x256xf32, #tpu.memory_space<vmem>>, vector<2x8x256xf32>,
    } else {
    }
    %3 = arith.index_cast %arg1 : i32 to index
    %4 = memref.load %arg2[%3] : memref<4xf32, #tpu.memory_space<smem>>
    %c0 = arith.constant 0 : index
    %c0_1 = arith.constant 0 : index
    %5 = vector.load %arg3[%c0, %c0_1] : memref<16x256xf32, #tpu.memory_space<vmem>>, vector<16x256xf32>
    %cst = arith.constant 1.000000e+00 : f32
    %6 = vector.broadcast %cst : f32 to vector<16x256xf32>
    %7 = arith.cmpf ole, %5, %6 : vector<16x256xf32>
    %cst_2 = arith.constant 3.14159274 : f32
    %8 = arith.mulf %cst_2, %4 : f32
    %9 = vector.broadcast %8 : f32 to vector<16x256xf32>
    %10 = arith.mulf %9, %5 : vector<16x256xf32>
    %11 = math.cos %10 : vector<16x256xf32>
    %12 = math.absf %11 : vector<16x256xf32>
    %cst_3 = arith.constant 0.000000e+00 : f32
    %13 = vector.broadcast %cst_3 : f32 to vector<16x256xf32>
    %14 = arith.select %7, %12, %13 : vector<16x256xi1>, vector<16x256xf32>
    %cst_4 = arith.constant 0.000000e+00 : f32
    %15 = vector.broadcast %cst_4 : f32 to vector<2x16x256xf32>
    %16 = vector.extract_strided_slice %14 {offsets = [0, 0], sizes = [1, 256], strides = [1, 1]} : vector<16x256xf32> to vector<1x256xf32>
    %17 = vector.shape_cast %16 : vector<1x256xf32> to vector<256xf32>
    %18 = vector.shape_cast %17 : vector<256xf32> to vector<1x1x256xf32>
    %c0_5 = arith.constant 0 : index
    %c1 = arith.constant 1 : index
    %c0_6 = arith.constant 0 : index
    %19 = vector.load %arg6[%c0_5, %c1, %c0_6] : memref<2x32x256xf32, #tpu.memory_space<vmem>>, vector<2x16x256xf32>
    %20 = vector.broadcast %18 : vector<1x1x256xf32> to vector<2x16x256xf32>
    %21 = arith.mulf %20, %19 : vector<2x16x256xf32>
    %22 = arith.addf %15, %21 : vector<2x16x256xf32>
    %23 = vector.extract_strided_slice %14 {offsets = [1, 0], sizes = [1, 256], strides = [1, 1]} : vector<16x256xf32> to vector<1x256xf32>
    %24 = vector.shape_cast %23 : vector<1x256xf32> to vector<256xf32>
    %25 = vector.shape_cast %24 : vector<256xf32> to vector<1x1x256xf32>
    %c0_7 = arith.constant 0 : index
    %c2 = arith.constant 2 : index
    %c0_8 = arith.constant 0 : index
    %26 = vector.load %arg6[%c0_7, %c2, %c0_8] : memref<2x32x256xf32, #tpu.memory_space<vmem>>, vector<2x16x256xf32>
    %27 = vector.broadcast %25 : vector<1x1x256xf32> to vector<2x16x256xf32>
    %28 = arith.mulf %27, %26 : vector<2x16x256xf32>
    %29 = arith.addf %22, %28 : vector<2x16x256xf32>
    %30 = vector.extract_strided_slice %14 {offsets = [2, 0], sizes = [1, 256], strides = [1, 1]} : vector<16x256xf32> to vector<1x256xf32>
    %31 = vector.shape_cast %30 : vector<1x256xf32> to vector<256xf32>
    %32 = vector.shape_cast %31 : vector<256xf32> to vector<1x1x256xf32>
    %c0_9 = arith.constant 0 : index
    %c3 = arith.constant 3 : index
    %c0_10 = arith.constant 0 : index
    %33 = vector.load %arg6[%c0_9, %c3, %c0_10] : memref<2x32x256xf32, #tpu.memory_space<vmem>>, vector<2x16x256xf32>
    %34 = vector.broadcast %32 : vector<1x1x256xf32> to vector<2x16x256xf32>
    %35 = arith.mulf %34, %33 : vector<2x16x256xf32>
    %36 = arith.addf %29, %35 : vector<2x16x256xf32>
    %37 = vector.extract_strided_slice %14 {offsets = [3, 0], sizes = [1, 256], strides = [1, 1]} : vector<16x256xf32> to vector<1x256xf32>
    %38 = vector.shape_cast %37 : vector<1x256xf32> to vector<256xf32>
    %39 = vector.shape_cast %38 : vector<256xf32> to vector<1x1x256xf32>
    %c0_11 = arith.constant 0 : index
    %c4 = arith.constant 4 : index
    %c0_12 = arith.constant 0 : index
    %40 = vector.load %arg6[%c0_11, %c4, %c0_12] : memref<2x32x256xf32, #tpu.memory_space<vmem>>, vector<2x16x256xf32>
    %41 = vector.broadcast %39 : vector<1x1x256xf32> to vector<2x16x256xf32>
    %42 = arith.mulf %41, %40 : vector<2x16x256xf32>
    %43 = arith.addf %36, %42 : vector<2x16x256xf32>
    %44 = vector.extract_strided_slice %14 {offsets = [4, 0], sizes = [1, 256], strides = [1, 1]} : vector<16x256xf32> to vector<1x256xf32>
    %45 = vector.shape_cast %44 : vector<1x256xf32> to vector<256xf32>
    %46 = vector.shape_cast %45 : vector<256xf32> to vector<1x1x256xf32>
    %c0_13 = arith.constant 0 : index
    %c5 = arith.constant 5 : index
    %c0_14 = arith.constant 0 : index
    %47 = vector.load %arg6[%c0_13, %c5, %c0_14] : memref<2x32x256xf32, #tpu.memory_space<vmem>>, vector<2x16x256xf32>
    %48 = vector.broadcast %46 : vector<1x1x256xf32> to vector<2x16x256xf32>
    %49 = arith.mulf %48, %47 : vector<2x16x256xf32>
    %50 = arith.addf %43, %49 : vector<2x16x256xf32>
    %51 = vector.extract_strided_slice %14 {offsets = [5, 0], sizes = [1, 256], strides = [1, 1]} : vector<16x256xf32> to vector<1x256xf32>
    %52 = vector.shape_cast %51 : vector<1x256xf32> to vector<256xf32>
    %53 = vector.shape_cast %52 : vector<256xf32> to vector<1x1x256xf32>
    %c0_15 = arith.constant 0 : index
    %c6 = arith.constant 6 : index
    %c0_16 = arith.constant 0 : index
    %54 = vector.load %arg6[%c0_15, %c6, %c0_16] : memref<2x32x256xf32, #tpu.memory_space<vmem>>, vector<2x16x256xf32>
    %55 = vector.broadcast %53 : vector<1x1x256xf32> to vector<2x16x256xf32>
    %56 = arith.mulf %55, %54 : vector<2x16x256xf32>
    %57 = arith.addf %50, %56 : vector<2x16x256xf32>
    %58 = vector.extract_strided_slice %14 {offsets = [6, 0], sizes = [1, 256], strides = [1, 1]} : vector<16x256xf32> to vector<1x256xf32>
    %59 = vector.shape_cast %58 : vector<1x256xf32> to vector<256xf32>
    %60 = vector.shape_cast %59 : vector<256xf32> to vector<1x1x256xf32>
    %c0_17 = arith.constant 0 : index
    %c7 = arith.constant 7 : index
    %c0_18 = arith.constant 0 : index
    %61 = vector.load %arg6[%c0_17, %c7, %c0_18] : memref<2x32x256xf32, #tpu.memory_space<vmem>>, vector<2x16x256xf32>
    %62 = vector.broadcast %60 : vector<1x1x256xf32> to vector<2x16x256xf32>
    %63 = arith.mulf %62, %61 : vector<2x16x256xf32>
    %64 = arith.addf %57, %63 : vector<2x16x256xf32>
    %65 = vector.extract_strided_slice %14 {offsets = [7, 0], sizes = [1, 256], strides = [1, 1]} : vector<16x256xf32> to vector<1x256xf32>
    %66 = vector.shape_cast %65 : vector<1x256xf32> to vector<256xf32>
    %67 = vector.shape_cast %66 : vector<256xf32> to vector<1x1x256xf32>
    %c0_19 = arith.constant 0 : index
    %c8 = arith.constant 8 : index
    %c0_20 = arith.constant 0 : index
    %68 = vector.load %arg6[%c0_19, %c8, %c0_20] : memref<2x32x256xf32, #tpu.memory_space<vmem>>, vector<2x16x256xf32>
    %69 = vector.broadcast %67 : vector<1x1x256xf32> to vector<2x16x256xf32>
    %70 = arith.mulf %69, %68 : vector<2x16x256xf32>
    %71 = arith.addf %64, %70 : vector<2x16x256xf32>
    %72 = vector.extract_strided_slice %14 {offsets = [8, 0], sizes = [1, 256], strides = [1, 1]} : vector<16x256xf32> to vector<1x256xf32>
    %73 = vector.shape_cast %72 : vector<1x256xf32> to vector<256xf32>
    %74 = vector.shape_cast %73 : vector<256xf32> to vector<1x1x256xf32>
    %c0_21 = arith.constant 0 : index
    %c9 = arith.constant 9 : index
    %c0_22 = arith.constant 0 : index
    %75 = vector.load %arg6[%c0_21, %c9, %c0_22] : memref<2x32x256xf32, #tpu.memory_space<vmem>>, vector<2x16x256xf32>
    %76 = vector.broadcast %74 : vector<1x1x256xf32> to vector<2x16x256xf32>
    %77 = arith.mulf %76, %75 : vector<2x16x256xf32>
    %78 = arith.addf %71, %77 : vector<2x16x256xf32>
    %79 = vector.extract_strided_slice %14 {offsets = [9, 0], sizes = [1, 256], strides = [1, 1]} : vector<16x256xf32> to vector<1x256xf32>
    %80 = vector.shape_cast %79 : vector<1x256xf32> to vector<256xf32>
    %81 = vector.shape_cast %80 : vector<256xf32> to vector<1x1x256xf32>
    %c0_23 = arith.constant 0 : index
    %c10 = arith.constant 10 : index
    %c0_24 = arith.constant 0 : index
    %82 = vector.load %arg6[%c0_23, %c10, %c0_24] : memref<2x32x256xf32, #tpu.memory_space<vmem>>, vector<2x16x256xf32>
    %83 = vector.broadcast %81 : vector<1x1x256xf32> to vector<2x16x256xf32>
    %84 = arith.mulf %83, %82 : vector<2x16x256xf32>
    %85 = arith.addf %78, %84 : vector<2x16x256xf32>
    %86 = vector.extract_strided_slice %14 {offsets = [10, 0], sizes = [1, 256], strides = [1, 1]} : vector<16x256xf32> to vector<1x256xf32>
    %87 = vector.shape_cast %86 : vector<1x256xf32> to vector<256xf32>
    %88 = vector.shape_cast %87 : vector<256xf32> to vector<1x1x256xf32>
    %c0_25 = arith.constant 0 : index
    %c11 = arith.constant 11 : index
    %c0_26 = arith.constant 0 : index
    %89 = vector.load %arg6[%c0_25, %c11, %c0_26] : memref<2x32x256xf32, #tpu.memory_space<vmem>>, vector<2x16x256xf32>
    %90 = vector.broadcast %88 : vector<1x1x256xf32> to vector<2x16x256xf32>
    %91 = arith.mulf %90, %89 : vector<2x16x256xf32>
    %92 = arith.addf %85, %91 : vector<2x16x256xf32>
    %93 = vector.extract_strided_slice %14 {offsets = [11, 0], sizes = [1, 256], strides = [1, 1]} : vector<16x256xf32> to vector<1x256xf32>
    %94 = vector.shape_cast %93 : vector<1x256xf32> to vector<256xf32>
    %95 = vector.shape_cast %94 : vector<256xf32> to vector<1x1x256xf32>
    %c0_27 = arith.constant 0 : index
    %c12 = arith.constant 12 : index
    %c0_28 = arith.constant 0 : index
    %96 = vector.load %arg6[%c0_27, %c12, %c0_28] : memref<2x32x256xf32, #tpu.memory_space<vmem>>, vector<2x16x256xf32>
    %97 = vector.broadcast %95 : vector<1x1x256xf32> to vector<2x16x256xf32>
    %98 = arith.mulf %97, %96 : vector<2x16x256xf32>
    %99 = arith.addf %92, %98 : vector<2x16x256xf32>
    %100 = vector.extract_strided_slice %14 {offsets = [12, 0], sizes = [1, 256], strides = [1, 1]} : vector<16x256xf32> to vector<1x256xf32>
    %101 = vector.shape_cast %100 : vector<1x256xf32> to vector<256xf32>
    %102 = vector.shape_cast %101 : vector<256xf32> to vector<1x1x256xf32>
    %c0_29 = arith.constant 0 : index
    %c13 = arith.constant 13 : index
    %c0_30 = arith.constant 0 : index
    %103 = vector.load %arg6[%c0_29, %c13, %c0_30] : memref<2x32x256xf32, #tpu.memory_space<vmem>>, vector<2x16x256xf32>
    %104 = vector.broadcast %102 : vector<1x1x256xf32> to vector<2x16x256xf32>
    %105 = arith.mulf %104, %103 : vector<2x16x256xf32>
    %106 = arith.addf %99, %105 : vector<2x16x256xf32>
    %107 = vector.extract_strided_slice %14 {offsets = [13, 0], sizes = [1, 256], strides = [1, 1]} : vector<16x256xf32> to vector<1x256xf32>
    %108 = vector.shape_cast %107 : vector<1x256xf32> to vector<256xf32>
    %109 = vector.shape_cast %108 : vector<256xf32> to vector<1x1x256xf32>
    %c0_31 = arith.constant 0 : index
    %c14 = arith.constant 14 : index
    %c0_32 = arith.constant 0 : index
    %110 = vector.load %arg6[%c0_31, %c14, %c0_32] : memref<2x32x256xf32, #tpu.memory_space<vmem>>, vector<2x16x256xf32>
    %111 = vector.broadcast %109 : vector<1x1x256xf32> to vector<2x16x256xf32>
    %112 = arith.mulf %111, %110 : vector<2x16x256xf32>
    %113 = arith.addf %106, %112 : vector<2x16x256xf32>
    %114 = vector.extract_strided_slice %14 {offsets = [14, 0], sizes = [1, 256], strides = [1, 1]} : vector<16x256xf32> to vector<1x256xf32>
    %115 = vector.shape_cast %114 : vector<1x256xf32> to vector<256xf32>
    %116 = vector.shape_cast %115 : vector<256xf32> to vector<1x1x256xf32>
    %c0_33 = arith.constant 0 : index
    %c15 = arith.constant 15 : index
    %c0_34 = arith.constant 0 : index
    %117 = vector.load %arg6[%c0_33, %c15, %c0_34] : memref<2x32x256xf32, #tpu.memory_space<vmem>>, vector<2x16x256xf32>
    %118 = vector.broadcast %116 : vector<1x1x256xf32> to vector<2x16x256xf32>
    %119 = arith.mulf %118, %117 : vector<2x16x256xf32>
    %120 = arith.addf %113, %119 : vector<2x16x256xf32>
    %121 = vector.extract_strided_slice %14 {offsets = [15, 0], sizes = [1, 256], strides = [1, 1]} : vector<16x256xf32> to vector<1x256xf32>
    %122 = vector.shape_cast %121 : vector<1x256xf32> to vector<256xf32>
    %123 = vector.shape_cast %122 : vector<256xf32> to vector<1x1x256xf32>
    %c0_35 = arith.constant 0 : index
    %c16 = arith.constant 16 : index
    %c0_36 = arith.constant 0 : index
    %124 = vector.load %arg6[%c0_35, %c16, %c0_36] : memref<2x32x256xf32, #tpu.memory_space<vmem>>, vector<2x16x256xf32>
    %125 = vector.broadcast %123 : vector<1x1x256xf32> to vector<2x16x256xf32>
    %126 = arith.mulf %125, %124 : vector<2x16x256xf32>
    %127 = arith.addf %120, %126 : vector<2x16x256xf32>
    %128 = vector.extract_strided_slice %127 {offsets = [0, 0, 0], sizes = [2, 16, 128], strides = [1, 1, 1]} : vector<2x16x256xf32> to vector<2x16x128xf32>
    %129 = vector.extract_strided_slice %127 {offsets = [0, 0, 128], sizes = [2, 16, 128], strides = [1, 1, 1]} : vector<2x16x256xf32> to vector<2x16x128xf32>
    %130 = arith.addf %128, %129 : vector<2x16x128xf32>
    %c64_i32 = arith.constant 64 : i32
    %131 = tpu.dynamic_rotate %130 by %c64_i32 dim 2 : vector<2x16x128xf32>, i32 -> vector<2x16x128xf32>
    %132 = arith.addf %130, %131 : vector<2x16x128xf32>
    %c96_i32 = arith.constant 96 : i32
    %133 = tpu.dynamic_rotate %132 by %c96_i32 dim 2 : vector<2x16x128xf32>, i32 -> vector<2x16x128xf32>
    %134 = arith.addf %132, %133 : vector<2x16x128xf32>
    %c112_i32 = arith.constant 112 : i32
    %135 = tpu.dynamic_rotate %134 by %c112_i32 dim 2 : vector<2x16x128xf32>, i32 -> vector<2x16x128xf32>
    %136 = arith.addf %134, %135 : vector<2x16x128xf32>
    %137 = vector.extract_strided_slice %136 {offsets = [0, 0, 0], sizes = [2, 16, 16], strides = [1, 1, 1]} : vector<2x16x128xf32> to vector<2x16x16xf32>
    %c0_37 = arith.constant 0 : index
    %c0_38 = arith.constant 0 : index
    %c0_39 = arith.constant 0 : index
    %c0_40 = arith.constant 0 : index
    %138 = vector.load %arg5[%c0_37, %c0_38, %c0_39, %c0_40] : memref<1x2x16x16xf32, #tpu.memory_space<vmem>>, vector<1x2x16x16xf32>
    %139 = vector.shape_cast %138 : vector<1x2x16x16xf32> to vector<2x16x16xf32>
    %140 = vector.shape_cast %137 : vector<2x16x16xf32> to vector<1x2x16x16xf32>
    tpu.vector_store %arg5[%c0_37, %c0_38, %c0_39, %c0_40], %140 {strides = array<i32>} : memref<1x2x16x16xf32, #tpu.memory_space<vmem>>, vector<1x2x16x16xf32>,
    return
  }
  func.func @transform_0(%arg0: i32, %arg1: i32, %arg2: memref<4xf32, #tpu.memory_space<smem>>) -> (i32, i32) {
    %c0_i32 = arith.constant 0 : i32
    %c0_i32_0 = arith.constant 0 : i32
    %c0_i32_1 = arith.constant 0 : i32
    return %c0_i32, %c0_i32_0 : i32, i32
  }
  func.func @transform_1(%arg0: i32, %arg1: i32, %arg2: memref<4xf32, #tpu.memory_space<smem>>) -> (i32, i32, i32) {
    %c0_i32 = arith.constant 0 : i32
    %c0_i32_0 = arith.constant 0 : i32
    %c0_i32_1 = arith.constant 0 : i32
    return %arg0, %c0_i32, %c0_i32_0 : i32, i32, i32
  }
  func.func @transform_2(%arg0: i32, %arg1: i32, %arg2: memref<4xf32, #tpu.memory_space<smem>>) -> (i32, i32, i32, i32) {
    %c0_i32 = arith.constant 0 : i32
    %c0_i32_0 = arith.constant 0 : i32
    %c0_i32_1 = arith.constant 0 : i32
    return %arg1, %arg0, %c0_i32, %c0_i32_0 : i32, i32, i32, i32
  }
}

</mosaic_0001>

<bundles_post_ra>
// kernel: _pct_forward.1
= control target key start
LH: loop header
LB: loop body
LE: loop exit
PB: predicated region body
PF: predicated region fallthrough
CT: control target
= control target key end

     0   :  { %s4486_s0 = inlined_call_operand.vmem [shape: f32[4], index: 0, kind: input, shape index: {}]   ;;  %s4487_s1 = inlined_call_operand.hbm [shape: f32[16,256], index: 1, kind: input, shape index: {}]   ;;  %s4488_s2 = inlined_call_operand.hbm [shape: f32[6,16,16], index: 2, kind: input, shape index: {}]   ;;  %s4489_s3 = inlined_call_operand.vmem [shape: f32[4,6,16,16], index: 3, kind: output, shape index: {}]  }
   0x1   :  { %s8_s14 = sshll.u32 %s4486_s0, 4  ;;  %s9_s14 = int_to_ptr.vmem [resolvable:$true] %s8_s14 }
   0x2   :  { %s2635_s15 = scalar_lea.vmem %s9_s14, 16  ;;  %p2640_p1 = scmp.lt.s32.totalorder %s9_s14, %s9_s14 }
   0x3   :  { %p2636_p0 = scmp.ne.s32.totalorder %s9_s14, %s2635_s15  ;;  %p2641_p2 = scmp.lt.s32.totalorder %s2635_s15, %s2635_s15 }
   0x5   :  { %p2642_p3 = por %p2641_p2, %p2640_p1 }
   0x7   :  { %p2643_p4 = pnand %p2642_p3, %p2636_p0 }
   0x9   :  { %2646 = shalt.err (!%p2643_p4)  }
   0xa   :  { %s2775_s16 = smov [#allocation4]  }
   0xb   :  { %11 = dma.vmem_to_smem %s9_s14, 16, %s2775_s16, [#allocation3] }
   0xc   :  { %2733 = dma.done.wait [#allocation3], 16 }
   0xd   :  { %2734 = vsyncadd [#allocation3], 4294967280 }
   0xe   :  { %13 = sfence }
   0xf   :  { %14 = vsyncpa [#allocation6], 0 }
  0x10   :  { %15 = vsyncpa [#allocation8], 0 }
  0x11   :  { %17 = vsyncpa [#allocation8 + $0x1], 0  ;;  %s2830_s17 = smov 0   ;;  %s2832_s18 = smov 0  }
  0x12   :  { %s2834_s0 = smov 0   ;;  %s2836_s19 = smov 0  }
  0x13   :  { %s2838_s20 = smov 0   ;;  %s2840_s21 = smov 0  }
  0x14   :  { %s2842_s22 = smov 0   ;;  %s2844_s23 = smov 0  }
  0x15 LB: > { %s2454_s24 = sadd.s32 4294967295, %s2773_s23   ;;  %p76_p5 = scmp.ne.s32.totalorder %s2749_s18, %s2745_s17  ;;  %s2773_s23 = sphi %s2844_s23, %s23_s23   ;;  %s2769_s22 = sphi %s2842_s22, %s4701_s22   ;;  %s2765_s21 = sphi %s2840_s21, %s4700_s21   ;;  %s2761_s20 = sphi %s2838_s20, %s4699_s20   ;;  %s2757_s19 = sphi %s2836_s19, %s4698_s19   ;;  %s2753_s0 = sphi %s2834_s0, %s4697_s0   ;;  %s2749_s18 = sphi %s2832_s18, %s4696_s18   ;;  %s2745_s17 = sphi %s2830_s17, %s4695_s17  }
  0x16   : > { %p2870_p6 = scmp.eq.s32.totalorder %s2454_s24, 0  ;;  %p2456_p7 = scmp.ge.s32.totalorder %s2773_s23, 1 }
  0x17   : > { %p115_p8 = scmp.lt.s32.totalorder %s2773_s23, 13  ;;  %s2776_s28 = smov [#allocation5]  }
  0x18   : > { %p2878_p9 = por %p2870_p6, %p76_p5  ;;  %s127_s29 = sshll.u32 %s2776_s28, 4  ;;  %s128_s29 = int_to_ptr.vmem [resolvable:$true] %s127_s29 }
  0x19   : > { %p2882_p10 = pnand %p2456_p7, %p115_p8  ;;  %s2658_s30 = scalar_lea.vmem %s128_s29, 512 }
  0x1a   : > { %p2659_p0 = scmp.ne.s32.totalorder %s128_s29, %s2658_s30  ;;  %p2666_p3 = scmp.lt.s32.totalorder %s128_s29, %s128_s29 }
  0x1b   : > { %p2513_p11 = pneg %p2882_p10  ;;  %p2667_p4 = scmp.lt.s32.totalorder %s2658_s30, %s2658_s30 }
  0x1d   : > { %p2514_p12 = pnand %p2513_p11, %p2870_p6  ;;  %p2668_p5 = por %p2667_p4, %p2666_p3 }
  0x1f   : > { %p2649_p13 = pneg %p2514_p12 }
  0x21   : > { %p2661_p1 = pnand %p2659_p0, %p2649_p13 }
  0x23   : > { %p2662_p2 = pneg %p2661_p1 }
  0x25   : > { %p2669_p7 = pnand %p2668_p5, %p2662_p2 }
  0x27   : > { %2672 = shalt.err (!%p2669_p7)
}
  0x28   : > { %s2777_s4 = smov 256   ;;  %s2778_s5 = smov 16  }
  0x29   : > { %2516 = dma.hbm_to_vmem [thread:$0]  (!%p2514_p12), %s4487_s1, 512, %s128_s29, [#allocation6], %s2777_s4, %s2777_s4, %s2778_s5  }
  0x2a   : > { %s32_s8 = sadd.s32 1, %s2765_s21  ;;  %s35_s9 = sadd.s32 1, %s2769_s22 }
  0x2b   : > { %p33_p8 = scmp.ge.s32.totalorder %s32_s8, 4  ;;  %s63_s10 = sadd.s32 1, %s2753_s0 }
  0x2c   : > { %p70_p11 = scmp.ne.s32.totalorder %s2753_s0, %s2749_s18  ;;  %p71_p13 = scmp.eq.s32.totalorder %s2773_s23, 0 }
  0x2d   : > { %s4703_s8 = smov (%p33_p8, %s32_s8), 0  ;;  %s4705_s9 = smov (!%p33_p8, %s35_s9), %s2769_s22 }
  0x2e   : > { %p2522_p0 = scmp.lt.s32.totalorder %s2773_s23, 12  ;;  %p37_p1 = scmp.ge.s32.totalorder %s4705_s9, 3 }
  0x2f   : > { %s141_s11 = sand.u32 1, %s2753_s0   ;;  %p72_p2 = por %p71_p13, %p70_p11 }
  0x30   : > { %s4707_s9 = smov (%p37_p1, %s4705_s9), 0  ;;  %s2459_s12 = sshll.u32 %s141_s11, 5 }
  0x31   : > { %s2489_s13 = sshll.u32 %s2769_s22, 9  ;;  %s60_s14 = ssub.s32 %s2769_s22, %s4707_s9 }
  0x32   : > { %p61_p12 = scmp.eq.s32.totalorder %s60_s14, 0  ;;  %s152_s17 = scalar_lea.hbm %s4488_s2, %s2489_s13 }
  0x33   : > { %s145_s24 = scalar_lea.vmem [#allocation7], %s2459_s12  ;;  %p2912_p3 = pnand %p2522_p0, %p72_p2 }
  0x34   : > { %s153_s28 = sshll.u32 %s145_s24, 4  ;;  %s142_s4 = scalar_lea.sflag [#allocation8], %s141_s11  ;;  %s154_s28 = int_to_ptr.vmem [resolvable:$true] %s153_s28 }
  0x35   : > { %s2917_s30 = scalar_select %p61_p12, %s2753_s0, %s63_s10  }
  0x36   : > { %p2675_p4 = pneg %p2912_p3  ;;  %s2686_s5 = scalar_lea.vmem %s154_s28, 512 }
  0x37   : > { %p2687_p5 = scmp.ne.s32.totalorder %s154_s28, %s2686_s5  ;;  %s2779_s6 = smov [#allocation7]  }
  0x38   : > { %s2691_s7 = sshll.u32 %s2779_s6, 4  ;;  %s2692_s7 = int_to_ptr.vmem [resolvable:$false] %s2691_s7 }
  0x39   : > { %p2689_p7 = pnand %p2687_p5, %p2675_p4  ;;  %s2693_s12 = scalar_lea.vmem %s2692_s7, 1024 }
  0x3a   : > { %p2694_p11 = scmp.lt.s32.totalorder %s154_s28, %s2692_s7  ;;  %p2695_p13 = scmp.lt.s32.totalorder %s2693_s12, %s2686_s5 }
  0x3b   : > { %p2690_p8 = pneg %p2689_p7 }
  0x3c   : > { %p2696_p0 = por %p2695_p13, %p2694_p11 }
  0x3e   : > { %p2697_p1 = pnand %p2696_p0, %p2690_p8 }
  0x40   : > { %2700 = shalt.err (!%p2697_p1)
}
  0x41   : > { %s2780_s13 = smov 128   ;;  %s2781_s10 = smov 8  }
  0x42   : > { %2520 = dma.hbm_to_vmem [thread:$0]  (!%p2912_p3), %s152_s17, 512, %s154_s28, %s142_s4, %s2780_s13, %s2780_s13, %s2781_s10  }
  0x43   : > { %165 = sbr.rel (%p2882_p10) target bundleno = 1124 (0x464), region = 28 }
  0x48   : > { %2736 = dma.done.wait (%p2870_p6), [#allocation6], 512  }
  0x49   : > { %2738 = vsyncadd (%p2870_p6), [#allocation6], 4294966784  ;;  %s171_s11 = sand.u32 1, %s2749_s18  }
  0x4a   : > { %s2465_s14 = sshll.u32 %s171_s11, 5  ;;  %s172_s15 = scalar_lea.sflag [#allocation8], %s171_s11 }
  0x4b   : > { %s175_s16 = scalar_lea.vmem [#allocation7], %s2465_s14 }
  0x4c   : > { %2740 = dma.done.wait (%p2878_p9), %s172_s15, 512  }
  0x4d   : > { %2742 = vsyncadd (%p2878_p9), %s172_s15, 4294966784  ;;  %s2466_s27 = sshll.u32 %s2761_s20, 1  ;;  %p203_p10 = scmp.lt.s32.totalorder %s2757_s19, 3 }
  0x4e   : > { %p205_p2 = scmp.lt.s32.totalorder %s2466_s27, 5  ;;  %p2469_p6 = scmp.ne.s32.totalorder %s2757_s19, 0 }
  0x4f   : > { %s204_s17 = scalar_select %p203_p10, %s2757_s19, 3 }
  0x50   : > { %s4709_s27 = smov (!%p205_p2, %s2466_s27), 5  ;;  %s2782_s26 = smov (!%p2469_p6), 7  }
  0x51   : > { %s2490_s25 = smul.u32 12, %s204_s17  ;;  %s2467_s24 = sshll.u32 %s4709_s27, 1 }
  0x52   : > { %216 = sbr.rel (%p2469_p6) target bundleno = 442 (0x1ba), region = 40  ;;  %s2783_s20 = smov (!%p2469_p6), 15  }
  0x53   : > { %s209_s28 = sadd.s32 %s2490_s25, %s2467_s24  ;;  %s2784_s7 = smov (!%p2469_p6), 30  }
  0x54   : > { %s2468_s29 = sshll.u32 %s209_s28, 3  ;;  %s2785_s12 = smov (!%p2469_p6), 45  }
  0x55   : > { %s2940_s6 = scalar_lea.vmem %s4489_s3, %s2468_s29  ;;  %s2786_s13 = smov (!%p2469_p6), 60  }
  0x56   : > { %s2787_s10 = smov (!%p2469_p6), 75   ;;  %s2788_s11 = smov (!%p2469_p6), 90  }
  0x57   : > { %v217_v0 = vld [vmem:[%s175_s16] sm:$0xff]  ;;  %v219_v1 = vld [vmem:[%s175_s16 + $0x10] sm:$0xff]  ;;  %v218_v2 = vld [vmem:[%s175_s16 + $0x8] sm:$0xff]  ;;  %vm237_vm0 = vcmask 56320   ;;  %vm242_vm1 = vcmask 187392   ;;  %s2789_s14 = smov 105  }
  0x58   : > { %225 = vrot.lane.b32.xlu0 %v217_v0, %s2782_s26  ;;  %229 = vrot.lane.b32.xlu1 %v219_v1, %s2782_s26  ;;  %v220_v3 = vld [vmem:[%s175_s16 + $0x18] sm:$0xff]  ;;  %s2790_s15 = smov 120   ;;  %s2791_s16 = smov 22   ;;  %v2796_v16 = vmov 0.0   ;;  %vm431_vm2 = vcmask 130048   ;;  %vm436_vm3 = vcmask 261120  }
  0x59   : > { %s2792_s27 = smov 37   ;;  %s2793_s17 = smov 52   ;;  %502 = vst [vmem:[#allocation2] sm:$0xff] %v2796_v16  ;;  %503 = vst [vmem:[#allocation2 + $0x50] sm:$0xff] %v2796_v16  ;;  %vm441_vm4 = vcmask 392192   ;;  %vm446_vm5 = vcmask 523264  }
  0x5a   : > { %s2794_s25 = smov 67   ;;  %s2795_s24 = smov 82   ;;  %504 = vst [vmem:[#allocation2 + $0x20] sm:$0xff] %v2796_v16  ;;  %505 = vst [vmem:[#allocation2 + $0x68] sm:$0xff] %v2796_v16  ;;  %vm451_vm6 = vcmask 654336   ;;  %vm456_vm7 = vcmask 785408  }
  0x5b   : > { %506 = vst [vmem:[#allocation2 + $0x30] sm:$0xff] %v2796_v16  ;;  %507 = vst [vmem:[#allocation2 + $0x70] sm:$0xff] %v2796_v16  ;;  %s2797_s28 = smov 97   ;;  %vm461_vm8 = vcmask 916480  }
  0x5c   : > { %227 = vrot.lane.b32.xlu0 %v218_v2, %s2782_s26  ;;  %231 = vrot.lane.b32.xlu1 %v220_v3, %s2782_s26  ;;  %508 = vst [vmem:[#allocation2 + $0x78] sm:$0xff] %v2796_v16  ;;  %509 = vst [vmem:[#allocation2 + $0x58] sm:$0xff] %v2796_v16 }
  0xca   : > { %v226_v4 = vpop.permute.xlu0 %225  ;;  %v230_v5 = vpop.permute.xlu1 %229 }
  0xcb   : > { %v238_v6 = vsel %vm237_vm0, 0.0, %v226_v4  ;;  %v240_v7 = vsel %vm237_vm0, 0.0, %v230_v5 }
  0xcc   : > { %v2948_v8 = vsel %vm242_vm1, %v238_v6, 0.0  ;;  %v2952_v9 = vsel %vm242_vm1, %v240_v7, 0.0 }
  0xcd   : > { %251 = vrot.lane.b32.xlu0 %v2948_v8, %s2783_s20 }
  0xce   : > { %v228_v10 = vpop.permute.xlu0 %227  ;;  %v232_v11 = vpop.permute.xlu1 %231 }
  0xcf   : > { %v239_v12 = vsel %vm237_vm0, 0.0, %v228_v10  ;;  %v241_v13 = vsel %vm237_vm0, 0.0, %v232_v11 }
  0xd0   : > { %v2955_v14 = vsel %vm242_vm1, %v239_v12, 0.0  ;;  %v2960_v15 = vsel %vm242_vm1, %v241_v13, 0.0 }
  0xd1   : > { %255 = vrot.lane.b32.xlu0 %v2952_v9, %s2783_s20  ;;  %253 = vrot.lane.b32.xlu1 %v2955_v14, %s2783_s20 }
  0xd5   : > { %263 = vrot.lane.b32.xlu0 %v2948_v8, %s2784_s7  ;;  %257 = vrot.lane.b32.xlu1 %v2960_v15, %s2783_s20 }
  0xd9   : > { %267 = vrot.lane.b32.xlu0 %v2952_v9, %s2784_s7  ;;  %265 = vrot.lane.b32.xlu1 %v2955_v14, %s2784_s7 }
  0xdd   : > { %275 = vrot.lane.b32.xlu0 %v2948_v8, %s2785_s12  ;;  %269 = vrot.lane.b32.xlu1 %v2960_v15, %s2784_s7 }
  0xe1   : > { %279 = vrot.lane.b32.xlu0 %v2952_v9, %s2785_s12  ;;  %277 = vrot.lane.b32.xlu1 %v2955_v14, %s2785_s12 }
  0xe5   : > { %287 = vrot.lane.b32.xlu0 %v2948_v8, %s2786_s13  ;;  %281 = vrot.lane.b32.xlu1 %v2960_v15, %s2785_s12 }
  0xe9   : > { %291 = vrot.lane.b32.xlu0 %v2952_v9, %s2786_s13  ;;  %289 = vrot.lane.b32.xlu1 %v2955_v14, %s2786_s13 }
  0xed   : > { %299 = vrot.lane.b32.xlu0 %v2948_v8, %s2787_s10  ;;  %293 = vrot.lane.b32.xlu1 %v2960_v15, %s2786_s13 }
  0xf1   : > { %303 = vrot.lane.b32.xlu0 %v2952_v9, %s2787_s10  ;;  %301 = vrot.lane.b32.xlu1 %v2955_v14, %s2787_s10 }
  0xf5   : > { %311 = vrot.lane.b32.xlu0 %v2948_v8, %s2788_s11  ;;  %305 = vrot.lane.b32.xlu1 %v2960_v15, %s2787_s10 }
  0xf9   : > { %315 = vrot.lane.b32.xlu0 %v2952_v9, %s2788_s11  ;;  %313 = vrot.lane.b32.xlu1 %v2955_v14, %s2788_s11 }
  0xfd   : > { %323 = vrot.lane.b32.xlu0 %v2948_v8, %s2789_s14  ;;  %317 = vrot.lane.b32.xlu1 %v2960_v15, %s2788_s11 }
 0x101   : > { %327 = vrot.lane.b32.xlu0 %v2952_v9, %s2789_s14  ;;  %325 = vrot.lane.b32.xlu1 %v2955_v14, %s2789_s14 }
 0x105   : > { %335 = vrot.lane.b32.xlu0 %v2948_v8, %s2790_s15  ;;  %329 = vrot.lane.b32.xlu1 %v2960_v15, %s2789_s14 }
 0x109   : > { %339 = vrot.lane.b32.xlu0 %v2952_v9, %s2790_s15  ;;  %337 = vrot.lane.b32.xlu1 %v2955_v14, %s2790_s15 }
 0x10d   : > { %347 = vrot.lane.b32.xlu0 %v2948_v8, %s2782_s26  ;;  %341 = vrot.lane.b32.xlu1 %v2960_v15, %s2790_s15 }
 0x111   : > { %351 = vrot.lane.b32.xlu0 %v2952_v9, %s2782_s26  ;;  %349 = vrot.lane.b32.xlu1 %v2955_v14, %s2782_s26 }
 0x115   : > { %359 = vrot.lane.b32.xlu0 %v2948_v8, %s2791_s16  ;;  %353 = vrot.lane.b32.xlu1 %v2960_v15, %s2782_s26 }
 0x119   : > { %363 = vrot.lane.b32.xlu0 %v2952_v9, %s2791_s16  ;;  %361 = vrot.lane.b32.xlu1 %v2955_v14, %s2791_s16 }
 0x11d   : > { %371 = vrot.lane.b32.xlu0 %v2948_v8, %s2792_s27  ;;  %365 = vrot.lane.b32.xlu1 %v2960_v15, %s2791_s16 }
 0x121   : > { %375 = vrot.lane.b32.xlu0 %v2952_v9, %s2792_s27  ;;  %373 = vrot.lane.b32.xlu1 %v2955_v14, %s2792_s27 }
 0x125   : > { %383 = vrot.lane.b32.xlu0 %v2948_v8, %s2793_s17  ;;  %377 = vrot.lane.b32.xlu1 %v2960_v15, %s2792_s27 }
 0x129   : > { %387 = vrot.lane.b32.xlu0 %v2952_v9, %s2793_s17  ;;  %385 = vrot.lane.b32.xlu1 %v2955_v14, %s2793_s17 }
 0x12d   : > { %395 = vrot.lane.b32.xlu0 %v2948_v8, %s2794_s25  ;;  %389 = vrot.lane.b32.xlu1 %v2960_v15, %s2793_s17 }
 0x131   : > { %399 = vrot.lane.b32.xlu0 %v2952_v9, %s2794_s25  ;;  %397 = vrot.lane.b32.xlu1 %v2955_v14, %s2794_s25 }
 0x135   : > { %407 = vrot.lane.b32.xlu0 %v2948_v8, %s2795_s24  ;;  %401 = vrot.lane.b32.xlu1 %v2960_v15, %s2794_s25 }
 0x139   : > { %411 = vrot.lane.b32.xlu0 %v2952_v9, %s2795_s24  ;;  %409 = vrot.lane.b32.xlu1 %v2955_v14, %s2795_s24 }
 0x13d   : > { %419 = vrot.lane.b32.xlu0 %v2948_v8, %s2797_s28  ;;  %413 = vrot.lane.b32.xlu1 %v2960_v15, %s2795_s24 }
 0x13f   : > { %v252_v17 = vpop.permute.xlu0 %251 }
 0x140   : > { %v432_v38 = vsel %vm431_vm2, %v2948_v8, %v252_v17 }
 0x141   : > { %423 = vrot.lane.b32.xlu0 %v2952_v9, %s2797_s28  ;;  %421 = vrot.lane.b32.xlu1 %v2955_v14, %s2797_s28 }
 0x143   : > { %v254_v18 = vpop.permute.xlu1 %253  ;;  %v256_v19 = vpop.permute.xlu0 %255 }
 0x144   : > { %v433_v44 = vsel %vm431_vm2, %v2955_v14, %v254_v18  ;;  %v434_v45 = vsel %vm431_vm2, %v2952_v9, %v256_v19 }
 0x145   : > { %425 = vrot.lane.b32.xlu1 %v2960_v15, %s2797_s28 }
 0x147   : > { %v258_v20 = vpop.permute.xlu1 %257  ;;  %v264_v21 = vpop.permute.xlu0 %263 }
 0x148   : > { %v437_v39 = vsel %vm436_vm3, %v432_v38, %v264_v21  ;;  %v435_v57 = vsel %vm431_vm2, %v2960_v15, %v258_v20 }
 0x14b   : > { %v266_v22 = vpop.permute.xlu1 %265  ;;  %v268_v23 = vpop.permute.xlu0 %267 }
 0x14c   : > { %v438_v47 = vsel %vm436_vm3, %v433_v44, %v266_v22  ;;  %v439_v48 = vsel %vm436_vm3, %v434_v45, %v268_v23 }
 0x14f   : > { %v270_v24 = vpop.permute.xlu1 %269  ;;  %v276_v25 = vpop.permute.xlu0 %275 }
 0x150   : > { %v442_v42 = vsel %vm441_vm4, %v437_v39, %v276_v25  ;;  %v440_v60 = vsel %vm436_vm3, %v435_v57, %v270_v24 }
 0x153   : > { %v278_v26 = vpop.permute.xlu1 %277  ;;  %v280_v27 = vpop.permute.xlu0 %279 }
 0x154   : > { %v443_v52 = vsel %vm441_vm4, %v438_v47, %v278_v26  ;;  %v444_v53 = vsel %vm441_vm4, %v439_v48, %v280_v27 }
 0x157   : > { %v282_v28 = vpop.permute.xlu1 %281  ;;  %v288_v29 = vpop.permute.xlu0 %287 }
 0x158   : > { %v447_v43 = vsel %vm446_vm5, %v442_v42, %v288_v29  ;;  %v445_v1 = vsel %vm441_vm4, %v440_v60, %v282_v28 }
 0x15b   : > { %v290_v30 = vpop.permute.xlu1 %289  ;;  %v292_v31 = vpop.permute.xlu0 %291 }
 0x15c   : > { %v448_v55 = vsel %vm446_vm5, %v443_v52, %v290_v30  ;;  %v449_v56 = vsel %vm446_vm5, %v444_v53, %v292_v31 }
 0x15f   : > { %v294_v32 = vpop.permute.xlu1 %293  ;;  %v300_v33 = vpop.permute.xlu0 %299 }
 0x160   : > { %v452_v46 = vsel %vm451_vm6, %v447_v43, %v300_v33  ;;  %v450_v4 = vsel %vm446_vm5, %v445_v1, %v294_v32 }
 0x163   : > { %v302_v34 = vpop.permute.xlu1 %301  ;;  %v304_v35 = vpop.permute.xlu0 %303 }
 0x164   : > { %v453_v58 = vsel %vm451_vm6, %v448_v55, %v302_v34  ;;  %v454_v59 = vsel %vm451_vm6, %v449_v56, %v304_v35 }
 0x167   : > { %v306_v36 = vpop.permute.xlu1 %305  ;;  %v312_v37 = vpop.permute.xlu0 %311 }
 0x168   : > { %v457_v49 = vsel %vm456_vm7, %v452_v46, %v312_v37  ;;  %v455_v5 = vsel %vm451_vm6, %v450_v4, %v306_v36 }
 0x16b   : > { %v314_v40 = vpop.permute.xlu1 %313  ;;  %v316_v41 = vpop.permute.xlu0 %315 }
 0x16c   : > { %v458_v61 = vsel %vm456_vm7, %v453_v58, %v314_v40  ;;  %v459_v62 = vsel %vm456_vm7, %v454_v59, %v316_v41 }
 0x16f   : > { %v318_v50 = vpop.permute.xlu1 %317  ;;  %v324_v51 = vpop.permute.xlu0 %323 }
 0x170   : > { %v462_v54 = vsel %vm461_vm8, %v457_v49, %v324_v51  ;;  %v460_v6 = vsel %vm456_vm7, %v455_v5, %v318_v50 }
 0x171   : > { %494 = vst [vmem:[#allocation2 + $0x60] sm:$0xff] %v462_v54 }
 0x173   : > { %v326_v63 = vpop.permute.xlu1 %325  ;;  %v328_v0 = vpop.permute.xlu0 %327 }
 0x174   : > { %v463_v2 = vsel %vm461_vm8, %v458_v61, %v326_v63  ;;  %v464_v3 = vsel %vm461_vm8, %v459_v62, %v328_v0 }
 0x175   : > { %496 = vst [vmem:[#allocation2 + $0x48] sm:$0xff] %v463_v2  ;;  %498 = vst [vmem:[#allocation2 + $0x40] sm:$0xff] %v464_v3 }
 0x177   : > { %v330_v7 = vpop.permute.xlu1 %329  ;;  %v336_v8 = vpop.permute.xlu0 %335 }
 0x178   : > { %v465_v9 = vsel %vm461_vm8, %v460_v6, %v330_v7 }
 0x179   : > { %500 = vst [vmem:[#allocation2 + $0x18] sm:$0xff] %v465_v9 }
 0x17b   : > { %v338_v10 = vpop.permute.xlu1 %337  ;;  %v340_v11 = vpop.permute.xlu0 %339 }
 0x17f   : > { %v342_v12 = vpop.permute.xlu1 %341  ;;  %v348_v13 = vpop.permute.xlu0 %347 }
 0x180   : > { %v466_v34 = vsel %vm431_vm2, %v336_v8, %v348_v13 }
 0x183   : > { %v350_v14 = vpop.permute.xlu1 %349  ;;  %v352_v15 = vpop.permute.xlu0 %351 }
 0x184   : > { %v467_v40 = vsel %vm431_vm2, %v338_v10, %v350_v14  ;;  %v468_v41 = vsel %vm431_vm2, %v340_v11, %v352_v15 }
 0x187   : > { %v354_v16 = vpop.permute.xlu1 %353  ;;  %v360_v17 = vpop.permute.xlu0 %359 }
 0x188   : > { %v470_v35 = vsel %vm436_vm3, %v466_v34, %v360_v17  ;;  %v469_v53 = vsel %vm431_vm2, %v342_v12, %v354_v16 }
 0x18b   : > { %v362_v18 = vpop.permute.xlu1 %361  ;;  %v364_v19 = vpop.permute.xlu0 %363 }
 0x18c   : > { %v471_v43 = vsel %vm436_vm3, %v467_v40, %v362_v18  ;;  %v472_v44 = vsel %vm436_vm3, %v468_v41, %v364_v19 }
 0x18f   : > { %v366_v20 = vpop.permute.xlu1 %365  ;;  %v372_v21 = vpop.permute.xlu0 %371 }
 0x190   : > { %v474_v38 = vsel %vm441_vm4, %v470_v35, %v372_v21  ;;  %v473_v56 = vsel %vm436_vm3, %v469_v53, %v366_v20 }
 0x193   : > { %v374_v22 = vpop.permute.xlu1 %373  ;;  %v376_v23 = vpop.permute.xlu0 %375 }
 0x194   : > { %v475_v48 = vsel %vm441_vm4, %v471_v43, %v374_v22  ;;  %v476_v49 = vsel %vm441_vm4, %v472_v44, %v376_v23 }
 0x197   : > { %v378_v24 = vpop.permute.xlu1 %377  ;;  %v384_v25 = vpop.permute.xlu0 %383 }
 0x198   : > { %v478_v39 = vsel %vm446_vm5, %v474_v38, %v384_v25  ;;  %v477_v61 = vsel %vm441_vm4, %v473_v56, %v378_v24 }
 0x19b   : > { %v386_v26 = vpop.permute.xlu1 %385  ;;  %v388_v27 = vpop.permute.xlu0 %387 }
 0x19c   : > { %v479_v51 = vsel %vm446_vm5, %v475_v48, %v386_v26  ;;  %v480_v52 = vsel %vm446_vm5, %v476_v49, %v388_v27 }
 0x19f   : > { %v390_v28 = vpop.permute.xlu1 %389  ;;  %v396_v29 = vpop.permute.xlu0 %395 }
 0x1a0   : > { %v482_v42 = vsel %vm451_vm6, %v478_v39, %v396_v29  ;;  %v481_v0 = vsel %vm446_vm5, %v477_v61, %v390_v28 }
 0x1a3   : > { %v398_v30 = vpop.permute.xlu1 %397  ;;  %v400_v31 = vpop.permute.xlu0 %399 }
 0x1a4   : > { %v483_v54 = vsel %vm451_vm6, %v479_v51, %v398_v30  ;;  %v484_v55 = vsel %vm451_vm6, %v480_v52, %v400_v31 }
 0x1a7   : > { %v402_v32 = vpop.permute.xlu1 %401  ;;  %v408_v33 = vpop.permute.xlu0 %407 }
 0x1a8   : > { %v486_v45 = vsel %vm456_vm7, %v482_v42, %v408_v33  ;;  %v485_v1 = vsel %vm451_vm6, %v481_v0, %v402_v32 }
 0x1ab   : > { %v410_v36 = vpop.permute.xlu1 %409  ;;  %v412_v37 = vpop.permute.xlu0 %411 }
 0x1ac   : > { %v487_v57 = vsel %vm456_vm7, %v483_v54, %v410_v36  ;;  %v488_v58 = vsel %vm456_vm7, %v484_v55, %v412_v37 }
 0x1af   : > { %v414_v46 = vpop.permute.xlu1 %413  ;;  %v420_v47 = vpop.permute.xlu0 %419 }
 0x1b0   : > { %v490_v50 = vsel %vm461_vm8, %v486_v45, %v420_v47  ;;  %v489_v2 = vsel %vm456_vm7, %v485_v1, %v414_v46 }
 0x1b1   : > { %495 = vst [vmem:[#allocation2 + $0x10] sm:$0xff] %v490_v50 }
 0x1b3   : > { %v422_v59 = vpop.permute.xlu1 %421  ;;  %v424_v60 = vpop.permute.xlu0 %423 }
 0x1b4   : > { %v491_v62 = vsel %vm461_vm8, %v487_v57, %v422_v59  ;;  %v492_v63 = vsel %vm461_vm8, %v488_v58, %v424_v60 }
 0x1b5   : > { %497 = vst [vmem:[#allocation2 + $0x28] sm:$0xff] %v491_v62  ;;  %499 = vst [vmem:[#allocation2 + $0x38] sm:$0xff] %v492_v63 }
 0x1b7   : > { %v426_v3 = vpop.permute.xlu1 %425 }
 0x1b8   : > { %v493_v4 = vsel %vm461_vm8, %v489_v2, %v426_v3 }
 0x1b9   : > { %501 = vst [vmem:[#allocation2 + $0x8] sm:$0xff] %v493_v4 }
 0x1ba PF: > { %s510_s29 = sld [smem:[#allocation4 + %s2757_s19]]  ;;  %v3084_v5 = vld [vmem:[#allocation5] sm:$0xff]  ;;  %v3086_v6 = vld [vmem:[#allocation5 + $0x8] sm:$0xff]  ;;  %v3088_v7 = vld [vmem:[#allocation5 + $0x10] sm:$0xff]  ;;  %v957_v24 = vlaneseq  ;;  %v2798_v41 = vmov 683565275  }
 0x1bb   : > { %v2799_v43 = vmov 2475754826   ;;  %v2800_v45 = vmov 2131351028   ;;  %v2801_v47 = vmov 2102212464  }
 0x1bc   : > { %v3113_v31 = vshrl.u32 %v957_v24, 7  ;;  %v2802_v49 = vmov 920167782   ;;  %v2803_v57 = vmov 1326507024   ;;  %s2804_s19 = smov 64  }
 0x1bd   : > { %s2805_s5 = smov 96   ;;  %s2806_s26 = smov 112  }
 0x1c0   : > { %s519_s4 = smul.f32 3.1415927, %s510_s29 }
 0x1c2   : > { %v3090_v8 = vstv %s519_s4 }
 0x1c3   : > { %v3094_v9 = vmul.f32 %v3090_v8, %v3084_v5  ;;  %v3098_v10 = vmul.f32 %v3090_v8, %v3086_v6  ;;  %v3102_v11 = vmul.f32 %v3090_v8, %v3088_v7 }
 0x1c5   : > { %v525_v12 = vand.u32 2147483647, %v3094_v9  ;;  %v528_v13 = vand.u32 2139095040, %v3094_v9  ;;  %v628_v14 = vand.u32 2147483647, %v3098_v10  ;;  %v631_v15 = vand.u32 2139095040, %v3098_v10 }
 0x1c6   : > { %v734_v20 = vand.u32 2139095040, %v3102_v11  ;;  %v731_v35 = vand.u32 2147483647, %v3102_v11 }
 0x1c7   : > { %v529_v16 = vshrl.u32 %v528_v13, 23  ;;  %v532_v17 = vand.u32 8388607, %v525_v12  ;;  %v632_v18 = vshrl.u32 %v631_v15, 23  ;;  %v635_v19 = vand.u32 8388607, %v628_v14 }
 0x1c8   : > { %v735_v23 = vshrl.u32 %v734_v20, 23 }
 0x1c9   : > { %v2470_v21 = vadd.s32 4294967169, %v529_v16  ;;  %v2474_v22 = vadd.s32 4294967169, %v632_v18  ;;  %v533_v26 = vor.u32 8388608, %v532_v17  ;;  %v636_v27 = vor.u32 8388608, %v635_v19 }
 0x1ca   : > { %v2478_v29 = vadd.s32 4294967169, %v735_v23 }
 0x1cb   : > { %v535_v25 = vadd.s32 1, %v2470_v21  ;;  %v638_v28 = vadd.s32 1, %v2474_v22  ;;  %v3116_v36 = vshll.u32 %v533_v26, 8  ;;  %v3118_v38 = vshll.u32 %v636_v27, 8 }
 0x1cc   : > { %v3120_v39 = vadd.s32 1, %v2478_v29 }
 0x1cd   : > { %vm536_vm9 = vcmp.gt.s32.totalorder %v535_v25, 0  ;;  %vm639_vm10 = vcmp.gt.s32.totalorder %v638_v28, 0 }
 0x1ce   : > { %v537_v30 = vsel %vm536_vm9, %v535_v25, 0  ;;  %v640_v34 = vsel %vm639_vm10, %v638_v28, 0  ;;  %vm742_vm15 = vcmp.gt.s32.totalorder %v3120_v39, 0  ;;  %vm527_vm9 = vcmp.lt.s32.totalorder %v3094_v9, 0 }
 0x1cf   : > { %v538_v32 = vshrl.u32 %v537_v30, 5  ;;  %v539_v33 = vand.u32 31, %v537_v30  ;;  %v642_v37 = vand.u32 31, %v640_v34  ;;  %v3127_v51 = vshrl.u32 %v640_v34, 5 }
 0x1d1   : > { %v540_v40 = vsub.s32 32, %v539_v33  ;;  %v542_v42 = vshll.u32 %v2798_v41, %v539_v33  ;;  %v545_v44 = vshll.u32 %v2799_v43, %v539_v33  ;;  %v548_v46 = vshll.u32 %v2800_v45, %v539_v33 }
 0x1d2   : > { %v551_v48 = vshll.u32 %v2801_v47, %v539_v33  ;;  %v554_v50 = vshll.u32 %v2802_v49, %v539_v33  ;;  %vm557_vm11 = vcmp.lt.s32.totalorder %v538_v32, 1  ;;  %vm558_vm12 = vcmp.lt.s32.totalorder %v538_v32, 2 }
 0x1d3   : > { %v541_v52 = vshrl.u32 %v2798_v41, %v540_v40  ;;  %v543_v53 = vshrl.u32 %v2799_v43, %v540_v40  ;;  %v546_v54 = vshrl.u32 %v2800_v45, %v540_v40  ;;  %v549_v55 = vshrl.u32 %v2801_v47, %v540_v40 }
 0x1d4   : > { %v552_v56 = vshrl.u32 %v2802_v49, %v540_v40  ;;  %v555_v58 = vshrl.u32 %v2803_v57, %v540_v40  ;;  %vm560_vm13 = vcmp.lt.s32.totalorder %v538_v32, 4  ;;  %v643_v62 = vsub.s32 32, %v642_v37 }
 0x1d5   : > { %v544_v59 = vor.u32 %v543_v53, %v542_v42  ;;  %v547_v60 = vor.u32 %v546_v54, %v545_v44  ;;  %v550_v61 = vor.u32 %v549_v55, %v548_v46  ;;  %vm559_vm14 = vcmp.lt.s32.totalorder %v538_v32, 3 }
 0x1d6   : > { %v553_v63 = vor.u32 %v552_v56, %v551_v48  ;;  %v556_v0 = vor.u32 %v555_v58, %v554_v50  ;;  %v645_v1 = vshll.u32 %v2798_v41, %v642_v37  ;;  %v648_v18 = vshll.u32 %v2799_v43, %v642_v37 }
 0x1d7   : > { %v561_v2 = vsel %vm557_vm11, %v541_v52, %v544_v59  ;;  %v562_v3 = vsel %vm560_vm13, %v550_v61, 2102212464  ;;  %v565_v4 = vsel %vm557_vm11, %v544_v59, %v547_v60  ;;  %v569_v13 = vsel %vm557_vm11, %v547_v60, %v550_v61 }
 0x1d8   : > { %v563_v15 = vsel %vm559_vm14, %v547_v60, %v562_v3  ;;  %v566_v16 = vsel %vm560_vm13, %v553_v63, 920167782  ;;  %v570_v17 = vsel %vm560_vm13, %v556_v0, 1326507024  ;;  %v644_v21 = vshrl.u32 %v2798_v41, %v643_v62 }
 0x1d9   : > { %v567_v19 = vsel %vm559_vm14, %v550_v61, %v566_v16  ;;  %v571_v20 = vsel %vm559_vm14, %v553_v63, %v570_v17  ;;  %v646_v22 = vshrl.u32 %v2799_v43, %v643_v62  ;;  %v564_v23 = vsel %vm558_vm12, %v561_v2, %v563_v15  ;;  %v3171_v61 = vld [vmem:[#allocation5 + $0x18] sm:$0xff] }
 0x1da   : > { %v568_v24 = vsel %vm558_vm12, %v565_v4, %v567_v19  ;;  %v572_v25 = vsel %vm558_vm12, %v569_v13, %v571_v20  ;;  %v649_v26 = vshrl.u32 %v2800_v45, %v643_v62  ;;  %v651_v40 = vshll.u32 %v2800_v45, %v642_v37 }
 0x1db   : > { %v3148_v27 = vmul.u32.u64.low %v3116_v36, %v572_v25  ;;  %v3149_v28 = vmul.u32.u64.high %v3116_v36, %v572_v25, %v3148_v27  ;;  %v3152_v29 = vmul.u32.u64.low %v3116_v36, %v568_v24  ;;  %v3153_v30 = vmul.u32.u64.high %v3116_v36, %v568_v24, %v3152_v29 }
 0x1dc   : > { %v647_v33 = vor.u32 %v646_v22, %v645_v1  ;;  %v650_v34 = vor.u32 %v649_v26, %v648_v18  ;;  %v652_v42 = vshrl.u32 %v2801_v47, %v643_v62  ;;  %v654_v32 = vshll.u32 %v2801_v47, %v642_v37 }
 0x1dd   : > { %v655_v44 = vshrl.u32 %v2802_v49, %v643_v62  ;;  %v657_v46 = vshll.u32 %v2802_v49, %v642_v37  ;;  %v658_v48 = vshrl.u32 %v2803_v57, %v643_v62  ;;  %v580_v50 = vmul.u32 %v3116_v36, %v564_v23 }
 0x1de   : > { %v653_v52 = vor.u32 %v652_v42, %v651_v40  ;;  %vm660_vm0 = vcmp.lt.s32.totalorder %v3127_v51, 1  ;;  %vm661_vm1 = vcmp.lt.s32.totalorder %v3127_v51, 2  ;;  %vm582_vm2 = vc.u32 %v3149_v28, %v3152_v29 }
 0x1df   : > { %v583_v53 = vadd.s32 1, %v3153_v30  ;;  %v656_v54 = vor.u32 %v655_v44, %v654_v32  ;;  %vm662_vm3 = vcmp.lt.s32.totalorder %v3127_v51, 3  ;;  %v659_v55 = vor.u32 %v658_v48, %v657_v46 }
 0x1e0   : > { %vm663_vm4 = vcmp.lt.s32.totalorder %v3127_v51, 4  ;;  %v664_v37 = vsel %vm660_vm0, %v644_v21, %v647_v33  ;;  %v668_v56 = vsel %vm660_vm0, %v647_v33, %v650_v34  ;;  %v672_v60 = vsel %vm660_vm0, %v650_v34, %v653_v52 }
 0x1e1   : > { %v584_v36 = vsel %vm582_vm2, %v583_v53, %v3153_v30  ;;  %v665_v58 = vsel %vm663_vm4, %v653_v52, 2102212464  ;;  %v669_v59 = vsel %vm663_vm4, %v656_v54, 920167782  ;;  %v673_v1 = vsel %vm663_vm4, %v659_v55, 1326507024 }
 0x1e2   : > { %v585_v62 = vadd.s32 %v584_v36, %v580_v50  ;;  %v666_v63 = vsel %vm662_vm3, %v650_v34, %v665_v58  ;;  %v670_v0 = vsel %vm662_vm3, %v653_v52, %v669_v59  ;;  %v674_v4 = vsel %vm662_vm3, %v656_v54, %v673_v1 }
 0x1e3   : > { %v667_v2 = vsel %vm661_vm1, %v664_v37, %v666_v63  ;;  %v671_v3 = vsel %vm661_vm1, %v668_v56, %v670_v0  ;;  %v743_v13 = vsel %vm742_vm15, %v3120_v39, 0  ;;  %v675_v16 = vsel %vm661_vm1, %v672_v60, %v674_v4 }
 0x1e4   : > { %v586_v15 = vadd.s32 536870912, %v585_v62  ;;  %v3189_v17 = vmul.u32.u64.low %v3118_v38, %v671_v3  ;;  %v3190_v18 = vmul.u32.u64.high %v3118_v38, %v671_v3, %v3189_v17  ;;  %v3195_v19 = vmul.f32 %v3090_v8, %v3171_v61 }
 0x1e5   : > { %v3198_v20 = vmul.u32.u64.low %v3118_v38, %v675_v16  ;;  %v3199_v21 = vmul.u32.u64.high %v3118_v38, %v675_v16, %v3198_v20  ;;  %v738_v39 = vand.u32 8388607, %v731_v35  ;;  %v745_v51 = vand.u32 31, %v743_v13 }
 0x1e6   : > { %v3203_v22 = vshrl.u32 %v586_v15, 30  ;;  %v683_v23 = vmul.u32 %v3118_v38, %v667_v2  ;;  %v686_v25 = vadd.s32 1, %v3190_v18  ;;  %v3209_v8 = vsub.s32 1, %v3113_v31 }
 0x1e7   : > { %v746_v26 = vsub.s32 32, %v745_v51  ;;  %vm685_vm5 = vc.u32 %v3199_v21, %v3189_v17  ;;  %v739_v27 = vor.u32 8388608, %v738_v39  ;;  %v837_v30 = vand.u32 2139095040, %v3195_v19 }
 0x1e8   : > { %v588_v24 = vshll.u32 %v3203_v22, 30  ;;  %v3215_v33 = vsub.s32 0, %v3113_v31  ;;  %v687_v38 = vsel %vm685_vm5, %v686_v25, %v3190_v18  ;;  %v744_v40 = vshrl.u32 %v743_v13, 5 }
 0x1e9   : > { %v3221_v42 = vsub.s32 2, %v3113_v31  ;;  %v688_v32 = vadd.s32 %v687_v38, %v683_v23  ;;  %v748_v44 = vshll.u32 %v2798_v41, %v745_v51  ;;  %v749_v46 = vshrl.u32 %v2799_v43, %v746_v26 }
 0x1ea   : > { %v3217_v34 = vsub.s32 %v585_v62, %v588_v24  ;;  %v751_v48 = vshll.u32 %v2799_v43, %v745_v51  ;;  %v752_v52 = vshrl.u32 %v2800_v45, %v746_v26  ;;  %v754_v53 = vshll.u32 %v2800_v45, %v745_v51 }
 0x1eb   : > { %v755_v54 = vshrl.u32 %v2801_v47, %v746_v26  ;;  %v689_v55 = vadd.s32 536870912, %v688_v32  ;;  %v757_v37 = vshll.u32 %v2801_v47, %v745_v51  ;;  %v3231_v56 = vshll.u32 %v739_v27, 8 }
 0x1ec   : > { %v591_v50 = vsub.s32 0, %v3217_v34  ;;  %v838_v36 = vshrl.u32 %v837_v30, 23  ;;  %v581_v58 = vadd.s32 %v3152_v29, %v3149_v28  ;;  %v747_v60 = vshrl.u32 %v2798_v41, %v746_v26 }
 0x1ed   : > { %vm766_vm6 = vcmp.lt.s32.totalorder %v744_v40, 4  ;;  %v3237_v62 = vshrl.u32 %v689_v55, 30  ;;  %v750_v63 = vor.u32 %v749_v46, %v748_v44  ;;  %v758_v0 = vshrl.u32 %v2802_v49, %v746_v26 }
 0x1ee   : > { %v2471_v59 = vmin.u32 %v591_v50, %v3217_v34  ;;  %v760_v1 = vshll.u32 %v2802_v49, %v745_v51  ;;  %v753_v3 = vor.u32 %v752_v52, %v751_v48  ;;  %v756_v4 = vor.u32 %v755_v54, %v754_v53 }
 0x1ef   : > { %v761_v13 = vshrl.u32 %v2803_v57, %v746_v26  ;;  %v691_v15 = vshll.u32 %v3237_v62, 30  ;;  %v759_v28 = vor.u32 %v758_v0, %v757_v37  ;;  %vm763_vm7 = vcmp.lt.s32.totalorder %v744_v40, 1 }
 0x1f0   : > { %v593_v2 = vclz %v2471_v59  ;;  %vm765_vm8 = vcmp.lt.s32.totalorder %v744_v40, 3  ;;  %v768_v18 = vsel %vm766_vm6, %v756_v4, 2102212464  ;;  %v2482_v20 = vadd.s32 4294967169, %v838_v36 }
 0x1f1   : > { %v762_v16 = vor.u32 %v761_v13, %v760_v1  ;;  %v3245_v39 = vsub.s32 %v688_v32, %v691_v15  ;;  %vm764_vm10 = vcmp.lt.s32.totalorder %v744_v40, 2  ;;  %v767_v51 = vsel %vm763_vm7, %v747_v60, %v750_v63 }
 0x1f2   : > { %v2472_v29 = vadd.s32 4294967294, %v593_v2  ;;  %v772_v23 = vsel %vm766_vm6, %v759_v28, 920167782  ;;  %v771_v24 = vsel %vm763_vm7, %v750_v63, %v753_v3  ;;  %v769_v38 = vsel %vm765_vm8, %v753_v3, %v768_v18 }
 0x1f3   : > { %v773_v25 = vsel %vm765_vm8, %v756_v4, %v772_v23  ;;  %v776_v26 = vsel %vm766_vm6, %v762_v16, 1326507024  ;;  %v694_v30 = vsub.s32 0, %v3245_v39  ;;  %v775_v32 = vsel %vm763_vm7, %v753_v3, %v756_v4 }
 0x1f4   : > { %vm2473_vm11 = vcmp.lt.s32.totalorder %v2472_v29, 0  ;;  %v777_v50 = vsel %vm765_vm8, %v759_v28, %v776_v26  ;;  %vm3259_vm12 = vcmp.le.f32.partialorder %v525_v12, 0.7853982  ;;  %v611_v53 = vsub.s32 4, %v3203_v22 }
 0x1f5   : > { %v596_v27 = vsel %vm2473_vm11, 0, %v2472_v29  ;;  %v2475_v54 = vmin.u32 %v694_v30, %v3245_v39  ;;  %v774_v55 = vsel %vm764_vm10, %v771_v24, %v773_v25  ;;  %v834_v37 = vand.u32 2147483647, %v3195_v19 }
 0x1f6   : > { %v597_v44 = vsub.s32 32, %v596_v27  ;;  %v598_v46 = vshll.u32 %v3217_v34, %v596_v27  ;;  %v601_v48 = vsub.s32 4294967266, %v596_v27  ;;  %vm630_vm13 = vcmp.lt.s32.totalorder %v3098_v10, 0 }
 0x1f7   : > { %v770_v34 = vsel %vm764_vm10, %v767_v51, %v769_v38  ;;  %v778_v60 = vsel %vm764_vm10, %v775_v32, %v777_v50  ;;  %v696_v12 = vclz %v2475_v54  ;;  %v844_v1 = vadd.s32 1, %v2482_v20 }
 0x1f8   : > { %v599_v36 = vshrl.u32 %v581_v58, %v597_v44  ;;  %v602_v59 = vadd.s32 127, %v601_v48  ;;  %v3271_v63 = vmul.u32.u64.low %v3231_v56, %v778_v60  ;;  %v3272_v0 = vmul.u32.u64.high %v3231_v56, %v778_v60, %v3271_v63 }
 0x1f9   : > { %v3275_v4 = vmul.u32.u64.low %v3231_v56, %v774_v55  ;;  %v3276_v13 = vmul.u32.u64.high %v3231_v56, %v774_v55, %v3275_v4  ;;  %v684_v58 = vadd.s32 %v3189_v17, %v3199_v21  ;;  %v2476_v15 = vadd.s32 4294967294, %v696_v12 }
 0x1fa   : > { %v600_v2 = vor.u32 %v599_v36, %v598_v46  ;;  %v603_v3 = vshll.u32 %v602_v59, 23  ;;  %v3283_v40 = vand.u32 8388607, %v834_v37  ;;  %vm845_vm14 = vcmp.gt.s32.totalorder %v844_v1, 0 }
 0x1fb   : > { %v612_v16 = vsel %vm527_vm9, %v611_v53, %v3203_v22  ;;  %v846_v18 = vsel %vm845_vm14, %v844_v1, 0  ;;  %vm2477_vm15 = vcmp.lt.s32.totalorder %v2476_v15, 0  ;;  %v714_v20 = vsub.s32 4, %v3237_v62 }
 0x1fc   : > { %v604_v28 = vor.u32 4788187, %v603_v3  ;;  %v607_v29 = vcvt.s32.f32 %v600_v2  ;;  %v786_v51 = vmul.u32 %v3231_v56, %v770_v34  ;;  %vm788_vm0 = vc.u32 %v3272_v0, %v3275_v4 }
 0x1fd   : > { %v699_v21 = vsel %vm2477_vm15, 0, %v2476_v15  ;;  %v789_v23 = vadd.s32 1, %v3276_v13  ;;  %v848_v24 = vand.u32 31, %v846_v18  ;;  %v842_v22 = vor.u32 8388608, %v3283_v40 }
 0x1fe   : > { %v605_v17 = vand.u32 2147483647, %v604_v28  ;;  %v700_v25 = vsub.s32 32, %v699_v21  ;;  %v701_v26 = vshll.u32 %v3245_v39, %v699_v21  ;;  %v704_v27 = vsub.s32 4294967266, %v699_v21 }
 0x1ff   : > { %v614_v38 = vsel %vm3259_vm12, 0, %v612_v16  ;;  %v790_v56 = vsel %vm788_vm0, %v789_v23, %v3276_v13  ;;  %v849_v32 = vsub.s32 32, %v848_v24  ;;  %vm3300_vm1 = vcmp.le.f32.partialorder %v628_v14, 0.7853982 }
 0x200   : > { %v608_v30 = vmul.f32 %v607_v29, %v605_v17  ;;  %v702_v46 = vshrl.u32 %v684_v58, %v700_v25  ;;  %v705_v48 = vadd.s32 127, %v704_v27  ;;  %v3307_v39 = vsel %vm630_vm13, %v714_v20, %v3237_v62 }
 0x201   : > { %v791_v50 = vadd.s32 %v790_v56, %v786_v51  ;;  %v3309_v54 = vshrl.u32 %v846_v18, 5  ;;  %v851_v55 = vshll.u32 %v2798_v41, %v848_v24  ;;  %v854_v36 = vshll.u32 %v2799_v43, %v848_v24 }
 0x202   : > { %v609_v53 = vxor.u32 2147483648, %v608_v30  ;;  %v703_v59 = vor.u32 %v702_v46, %v701_v26  ;;  %v706_v14 = vshll.u32 %v705_v48, 23  ;;  %v852_v60 = vshrl.u32 %v2799_v43, %v849_v32 }
 0x203   : > { %v792_v34 = vadd.s32 536870912, %v791_v50  ;;  %v855_v63 = vshrl.u32 %v2800_v45, %v849_v32  ;;  %v857_v62 = vshll.u32 %v2800_v45, %v848_v24  ;;  %v858_v1 = vshrl.u32 %v2801_v47, %v849_v32 }
 0x204   : > { %v610_v12 = vsel %vm527_vm9, %v609_v53, %v608_v30  ;;  %v707_v3 = vor.u32 4788187, %v706_v14  ;;  %v710_v13 = vcvt.s32.f32 %v703_v59  ;;  %v860_v15 = vshll.u32 %v2801_v47, %v848_v24 }
 0x205   : > { %v613_v2 = vsel %vm3259_vm12, %v3094_v9, %v610_v12  ;;  %v793_v58 = vshrl.u32 %v792_v34, 30  ;;  %v861_v43 = vshrl.u32 %v2802_v49, %v849_v32  ;;  %vm866_vm2 = vcmp.lt.s32.totalorder %v3309_v54, 1 }
 0x206   : > { %2619 = vcosq.f32 %v613_v2  ;;  %v708_v40 = vand.u32 2147483647, %v707_v3  ;;  %v853_v45 = vor.u32 %v852_v60, %v851_v55  ;;  %v856_v29 = vor.u32 %v855_v63, %v854_v36 }
 0x207   : > { %2621 = vsinq.f32 %v613_v2  ;;  %v794_v28 = vshll.u32 %v793_v58, 30  ;;  %v862_v16 = vor.u32 %v861_v43, %v860_v15  ;;  %v863_v18 = vshll.u32 %v2802_v49, %v848_v24 }
 0x208   : > { %v864_v52 = vshrl.u32 %v2803_v57, %v849_v32  ;;  %v711_v20 = vmul.f32 %v710_v13, %v708_v40  ;;  %v850_v17 = vshrl.u32 %v2798_v41, %v849_v32  ;;  %v859_v47 = vor.u32 %v858_v1, %v857_v62 }
 0x209   : > { %v3327_v51 = vsub.s32 %v791_v50, %v794_v28  ;;  %v3330_v21 = vand.u32 3, %v614_v38  ;;  %v717_v23 = vsel %vm3300_vm1, 0, %v3307_v39  ;;  %vm733_vm3 = vcmp.lt.s32.totalorder %v3102_v11, 0 }
 0x20a   : > { %vm868_vm4 = vcmp.lt.s32.totalorder %v3309_v54, 3  ;;  %vm869_vm5 = vcmp.lt.s32.totalorder %v3309_v54, 4  ;;  %v712_v49 = vxor.u32 2147483648, %v711_v20  ;;  %v865_v24 = vor.u32 %v864_v52, %v863_v18 }
 0x20b   : > { %v797_v57 = vsub.s32 0, %v3327_v51  ;;  %v871_v41 = vsel %vm869_vm5, %v859_v47, 2102212464  ;;  %vm867_vm6 = vcmp.lt.s32.totalorder %v3309_v54, 2  ;;  %v874_v25 = vsel %vm866_vm2, %v853_v45, %v856_v29 }
 0x20c   : > { %v875_v26 = vsel %vm869_vm5, %v862_v16, 920167782  ;;  %v882_v27 = vshll.u32 %v842_v22, 8  ;;  %v713_v30 = vsel %vm630_vm13, %v712_v49, %v711_v20  ;;  %v817_v56 = vsub.s32 4, %v793_v58 }
 0x20d   : > { %v2479_v38 = vmin.u32 %v797_v57, %v3327_v51  ;;  %v870_v32 = vsel %vm866_vm2, %v850_v17, %v853_v45  ;;  %v716_v46 = vsel %vm3300_vm1, %v3098_v10, %v713_v30  ;;  %v872_v48 = vsel %vm868_vm4, %v856_v29, %v871_v41 }
 0x20e   : > { %v876_v39 = vsel %vm868_vm4, %v859_v47, %v875_v26  ;;  %v878_v22 = vsel %vm866_vm2, %v856_v29, %v859_v47  ;;  %2623 = vcosq.f32 %v716_v46  ;;  %v879_v55 = vsel %vm869_vm5, %v865_v24, 1326507024 }
 0x20f   : > { %v799_v50 = vclz %v2479_v38  ;;  %v877_v53 = vsel %vm867_vm6, %v874_v25, %v876_v39  ;;  %2625 = vsinq.f32 %v716_v46  ;;  %v880_v44 = vsel %vm868_vm4, %v862_v16, %v879_v55 }
 0x210   : > { %v3366_v36 = vmul.u32.u64.low %v882_v27, %v877_v53  ;;  %v3367_v59 = vmul.u32.u64.high %v882_v27, %v877_v53, %v3366_v36  ;;  %vm515_vm7 = vcmp.le.f32.partialorder %v3084_v5, 1.0  ;;  %vm619_vm8 = vcmp.lt.s32.totalorder %v3330_v21, 2 }
 0x211   : > { %v2480_v14 = vadd.s32 4294967294, %v799_v50  ;;  %v873_v34 = vsel %vm867_vm6, %v870_v32, %v872_v48  ;;  %v881_v60 = vsel %vm867_vm6, %v878_v22, %v880_v44  ;;  %vm620_vm9 = vcmp.eq.s32.totalorder %v3330_v21, 0  ;;  %v993_v22 = vld [vmem:[#allocation2 + $0x20] sm:$0xfc] }
 0x212   : > { %vm623_vm10 = vcmp.eq.s32.totalorder %v3330_v21, 2  ;;  %v3378_v12 = vmul.u32.u64.low %v882_v27, %v881_v60  ;;  %v3379_v63 = vmul.u32.u64.high %v882_v27, %v881_v60, %v3378_v12  ;;  %v3381_v1 = vand.u32 3, %v717_v23 }
 0x213   : > { %v2620_v62 = vpop.eup %2619  ;;  %v787_v2 = vadd.s32 %v3275_v4, %v3272_v0  ;;  %vm2481_vm11 = vcmp.lt.s32.totalorder %v2480_v14, 0  ;;  %v818_v3 = vsel %vm733_vm3, %v817_v56, %v793_v58  ;;  %v889_v43 = vmul.u32 %v882_v27, %v873_v34  ;;  %v995_v12 = vld [vmem:[#allocation2 + $0x18] sm:$0x3] }
 0x214   : > { %v2622_v13 = vpop.eup %2621  ;;  %v624_v54 = vxor.u32 2147483648, %v2620_v62  ;;  %v802_v15 = vsel %vm2481_vm11, 0, %v2480_v14  ;;  %v892_v40 = vadd.s32 1, %v3367_v59  ;;  %vm617_vm12 = vweird.f32 %v3094_v9  ;;  %v3446_v14 = vld [vmem:[#allocation2 + $0x40] sm:$0xff] }
 0x215   : > { %v621_v28 = vxor.u32 2147483648, %v2622_v13  ;;  %v803_v45 = vsub.s32 32, %v802_v15  ;;  %v804_v29 = vshll.u32 %v3327_v51, %v802_v15  ;;  %v807_v16 = vsub.s32 4294967266, %v802_v15 }
 0x216   : > { %v625_v0 = vsel %vm623_vm10, %v624_v54, %v2622_v13  ;;  %vm3394_vm13 = vcmp.le.f32.partialorder %v731_v35, 0.7853982  ;;  %vm891_vm14 = vc.u32 %v3379_v63, %v3366_v36  ;;  %vm720_vm15 = vweird.f32 %v3098_v10 }
 0x217   : > { %v622_v58 = vsel %vm620_vm9, %v2620_v62, %v621_v28  ;;  %v805_v18 = vshrl.u32 %v787_v2, %v803_v45  ;;  %v808_v52 = vadd.s32 127, %v807_v16  ;;  %vm836_vm0 = vcmp.lt.s32.totalorder %v3195_v19, 0 }
 0x218   : > { %v893_v9 = vsel %vm891_vm14, %v892_v40, %v3367_v59  ;;  %v626_v35 = vsel %vm619_vm8, %v622_v58, %v625_v0  ;;  %vm722_vm1 = vcmp.lt.s32.totalorder %v3381_v1, 2  ;;  %v820_v20 = vsel %vm3394_vm13, 0, %v818_v3  ;;  %v951_v59 = vld [vmem:[#allocation2 + $0x20] sm:$0xfe] }
 0x219   : > { %v894_v51 = vadd.s32 %v893_v9, %v889_v43  ;;  %v627_v17 = vsel %vm617_vm12, nan, %v626_v35  ;;  %vm723_vm2 = vcmp.eq.s32.totalorder %v3381_v1, 0  ;;  %v806_v47 = vor.u32 %v805_v18, %v804_v29  ;;  %v1078_v35 = vld [vmem:[#allocation2 + $0x20] sm:$0xf8] }
 0x21a   : > { %v809_v23 = vshll.u32 %v808_v52, 23  ;;  %vm3413_vm4 = vcmp.le.f32.partialorder %v834_v37, 0.7853982  ;;  %vm516_vm5 = vcmp.le.f32.partialorder %v3086_v6, 1.0  ;;  %vm726_vm6 = vcmp.eq.s32.totalorder %v3381_v1, 2 }
 0x21b   : > { %v895_v21 = vadd.s32 536870912, %v894_v51  ;;  %v937_v57 = vand.u32 2147483647, %v627_v17  ;;  %vm1029_vm8 = vcmask 1046528   ;;  %v813_v41 = vcvt.s32.f32 %v806_v47  ;;  %v2624_v27 = vpop.eup %2623  ;;  %v952_v47 = vld [vmem:[#allocation2 + $0x68] sm:$0xfe] }
 0x21c   : > { %v810_v24 = vor.u32 4788187, %v809_v23  ;;  %v3419_v25 = vand.u32 3, %v820_v20  ;;  %v3422_v26 = vsub.s32 3, %v3113_v31  ;;  %v3429_v38 = vsub.s32 4, %v3113_v31  ;;  %v2626_v32 = vpop.eup %2625 }
 0x21d   : > { %v896_v30 = vshrl.u32 %v895_v21, 30  ;;  %v3426_v37 = vsel %vm515_vm7, %v937_v57, 0.0  ;;  %v3432_v56 = vsub.s32 5, %v3113_v31  ;;  %v727_v46 = vxor.u32 2147483648, %v2624_v27  ;;  %v994_v23 = vld [vmem:[#allocation2 + $0x68] sm:$0xfc] }
 0x21e   : > { %v811_v48 = vand.u32 2147483647, %v810_v24  ;;  %v3436_v39 = vrot.slane %v3426_v37, %v3215_v33  ;;  %v3440_v50 = vrot.slane %v3426_v37, %v3209_v8  ;;  %v724_v5 = vxor.u32 2147483648, %v2626_v32  ;;  %v3495_v57 = vld [vmem:[#allocation2 + $0x38] sm:$0xff]  ;;  %v1079_v6 = vld [vmem:[#allocation2 + $0x68] sm:$0xf8] }
 0x21f   : > { %v3444_v53 = vadd.s32 %v3366_v36, %v3379_v63  ;;  %v897_v55 = vshll.u32 %v896_v30, 30  ;;  %v920_v44 = vsub.s32 4, %v896_v30  ;;  %v728_v34 = vsel %vm726_vm6, %v727_v46, %v2626_v32 }
 0x220   : > { %v814_v60 = vmul.f32 %v813_v41, %v811_v48  ;;  %v3452_v62 = vrot.slane %v3426_v37, %v3221_v42  ;;  %v3455_v2 = vsub.s32 6, %v3113_v31  ;;  %v725_v36 = vsel %vm723_vm2, %v2624_v27, %v724_v5 }
 0x221   : > { %v3459_v63 = vsub.s32 %v894_v51, %v897_v55  ;;  %v921_v3 = vsel %vm836_vm0, %v920_v44, %v896_v30  ;;  %v1011_v13 = vmul.f32 %v3440_v50, %v993_v22  ;;  %v729_v54 = vsel %vm722_vm1, %v725_v36, %v728_v34 }
 0x222   : > { %v815_v15 = vxor.u32 2147483648, %v814_v60  ;;  %v971_v43 = vmul.f32 %v3436_v39, %v951_v59  ;;  %v1013_v40 = vmul.f32 %v3440_v50, %v3446_v14  ;;  %v730_v28 = vsel %vm720_vm15, nan, %v729_v54 }
 0x223   : > { %v900_v45 = vsub.s32 0, %v3459_v63  ;;  %v923_v29 = vsel %vm3413_vm4, 0, %v921_v3  ;;  %v3475_v16 = vmul.f32 %v3440_v50, %v995_v12  ;;  %v938_v0 = vand.u32 2147483647, %v730_v28 }
 0x224   : > { %v816_v1 = vsel %vm733_vm3, %v815_v15, %v814_v60  ;;  %v1040_v58 = vrot.slane %v1011_v13, 1  ;;  %v1041_v18 = vrot.slane %v1013_v40, 1  ;;  %v973_v9 = vmul.f32 %v3436_v39, %v3446_v14  ;;  %v1080_v60 = vld [vmem:[#allocation2 + $0x18] sm:$0x7]  ;;  %v1081_v13 = vld [vmem:[#allocation2 + $0x8] sm:$0x7] }
 0x225   : > { %v819_v52 = vsel %vm3394_vm13, %v3102_v11, %v816_v1  ;;  %v2483_v10 = vmin.u32 %v900_v45, %v3459_v63  ;;  %v3486_v20 = vsub.s32 7, %v3113_v31  ;;  %v3488_v51 = vand.u32 3, %v923_v29  ;;  %v996_v31 = vld [vmem:[#allocation2 + $0x8] sm:$0x3] }
 0x226   : > { %2627 = vcosq.f32 %v819_v52  ;;  %v3492_v17 = vsel %vm516_vm5, %v938_v0, 0.0  ;;  %v1042_v4 = vsel %vm1029_vm8, %v1040_v58, %v1041_v18  ;;  %vm1114_vm3 = vcmask 1045504  }
 0x227   : > { %2629 = vsinq.f32 %v819_v52  ;;  %v902_v21 = vclz %v2483_v10  ;;  %v3499_v24 = vrot.slane %v3492_v17, %v3215_v33  ;;  %v3503_v41 = vrot.slane %v3492_v17, %v3209_v8 }
 0x228   : > { %v4497_v27 = vrot.slane %v3475_v16, 1  ;;  %v1068_v30 = vadd.f32 %v1042_v4, %v971_v43  ;;  %v3508_v32 = vrot.slane %v3492_v17, %v3221_v42  ;;  %v1096_v46 = vmul.f32 %v3452_v62, %v1078_v35 }
 0x229   : > { %v2484_v48 = vadd.s32 4294967294, %v902_v21  ;;  %v972_v22 = vmul.f32 %v3499_v24, %v952_v47  ;;  %v974_v5 = vmul.f32 %v3499_v24, %v3495_v57  ;;  %v1012_v55 = vmul.f32 %v3503_v41, %v994_v23 }
 0x22a   : > { %v1014_v44 = vmul.f32 %v3503_v41, %v3495_v57  ;;  %v3518_v59 = vmul.f32 %v3503_v41, %v996_v31  ;;  %v1047_v34 = vsel %vm1029_vm8, %v1041_v18, %v4497_v27  ;;  %v1097_v12 = vmul.f32 %v3508_v32, %v1079_v6 }
 0x22b   : > { %vm829_vm7 = vcmp.eq.s32.totalorder %v3419_v25, 2  ;;  %vm2485_vm9 = vcmp.lt.s32.totalorder %v2484_v48, 0  ;;  %v1043_v36 = vrot.slane %v1012_v55, 1  ;;  %v1070_v3 = vadd.f32 %v1047_v34, %v973_v9  ;;  %v1164_v34 = vld [vmem:[#allocation2 + $0x68] sm:$0xf0] }
 0x22c   : > { %v1098_v54 = vmul.f32 %v3452_v62, %v3446_v14  ;;  %vm826_vm10 = vcmp.eq.s32.totalorder %v3419_v25, 0  ;;  %v905_v15 = vsel %vm2485_vm9, 0, %v2484_v48  ;;  %v1044_v43 = vrot.slane %v1014_v44, 1  ;;  %v1163_v44 = vld [vmem:[#allocation2 + $0x20] sm:$0xf0] }
 0x22d   : > { %v4496_v40 = vrot.slane %v3518_v59, 1  ;;  %v1099_v28 = vmul.f32 %v3508_v32, %v3495_v57  ;;  %vm825_vm11 = vcmp.lt.s32.totalorder %v3419_v25, 2  ;;  %v906_v45 = vsub.s32 32, %v905_v15 }
 0x22e   : > { %v907_v29 = vshll.u32 %v3459_v63, %v905_v15  ;;  %v910_v1 = vsub.s32 4294967266, %v905_v15  ;;  %v3534_v0 = vmul.f32 %v3452_v62, %v1080_v60  ;;  %vm823_vm12 = vweird.f32 %v3102_v11 }
 0x22f   : > { %v1045_v58 = vsel %vm1029_vm8, %v1043_v36, %v1044_v43  ;;  %v1049_v18 = vsel %vm1029_vm8, %v1044_v43, %v4496_v40  ;;  %v3542_v52 = vmul.f32 %v3508_v32, %v1081_v13  ;;  %v1125_v10 = vrot.slane %v1096_v46, 2  ;;  %v1165_v43 = vld [vmem:[#allocation2 + $0x18] sm:$0xf] }
 0x230   : > { %4584 = vst [vmem:[#allocation12_spill] sm:$0xff] %v3534_v0  ;;  %v908_v9 = vshrl.u32 %v3444_v53, %v906_v45  ;;  %v911_v35 = vadd.s32 127, %v910_v1  ;;  %v1069_v63 = vadd.f32 %v1045_v58, %v972_v22  ;;  %v1071_v47 = vadd.f32 %v1049_v18, %v974_v5  ;;  %v1166_v18 = vld [vmem:[#allocation2 + $0x8] sm:$0xf] }
 0x231   : > { %4585 = vst [vmem:[#allocation13_spill] sm:$0xff] %v3542_v52  ;;  %vm1199_vm13 = vcmask 1044480   ;;  %v1126_v23 = vrot.slane %v1098_v54, 2  ;;  %v1128_v4 = vrot.slane %v1097_v12, 2  ;;  %v1129_v21 = vrot.slane %v1099_v28, 2 }
 0x232   : > { %v4494_v31 = vrot.slane %v3534_v0, 2  ;;  %vm517_vm14 = vcmp.le.f32.partialorder %v3088_v7, 1.0  ;;  %v909_v6 = vor.u32 %v908_v9, %v907_v29  ;;  %v912_v48 = vshll.u32 %v911_v35, 23  ;;  %v2032_v0 = vld [vmem:[#allocation2 + $0x40] sm:$0x80] }
 0x233   : > { %v4493_v55 = vrot.slane %v3542_v52, 2  ;;  %v3550_v46 = vrot.slane %v3426_v37, %v3422_v26  ;;  %v1127_v53 = vsel %vm1114_vm3, %v1125_v10, %v1126_v23  ;;  %v1130_v22 = vsel %vm1114_vm3, %v1128_v4, %v1129_v21  ;;  %v2628_v12 = vpop.eup %2627 }
 0x234   : > { %v1132_v5 = vsel %vm1114_vm3, %v1126_v23, %v4494_v31  ;;  %v3559_v60 = vrot.slane %v3492_v17, %v3422_v26  ;;  %v913_v36 = vor.u32 4788187, %v912_v48  ;;  %v916_v13 = vcvt.s32.f32 %v909_v6  ;;  %v2630_v28 = vpop.eup %2629 }
 0x235   : > { %v1134_v54 = vsel %vm1114_vm3, %v1129_v21, %v4493_v55  ;;  %v1153_v15 = vadd.f32 %v1127_v53, %v1068_v30  ;;  %v830_v45 = vxor.u32 2147483648, %v2628_v12  ;;  %v1154_v29 = vadd.f32 %v1130_v22, %v1069_v63 }
 0x236   : > { %v1155_v1 = vadd.f32 %v1132_v5, %v1070_v3  ;;  %v1156_v58 = vadd.f32 %v1134_v54, %v1071_v47  ;;  %v827_v10 = vxor.u32 2147483648, %v2630_v28  ;;  %v914_v9 = vand.u32 2147483647, %v913_v36 }
 0x237   : > { %v1181_v35 = vmul.f32 %v3550_v46, %v1163_v44  ;;  %v1182_v23 = vmul.f32 %v3559_v60, %v1164_v34  ;;  %v831_v4 = vsel %vm829_vm7, %v830_v45, %v2630_v28  ;;  %v1183_v21 = vmul.f32 %v3550_v46, %v3446_v14  ;;  %v1248_v45 = vld [vmem:[#allocation2 + $0x20] sm:$0xe0] }
 0x238   : > { %v1184_v30 = vmul.f32 %v3559_v60, %v3495_v57  ;;  %v3573_v63 = vmul.f32 %v3550_v46, %v1165_v43  ;;  %v828_v3 = vsel %vm826_vm10, %v2628_v12, %v827_v10  ;;  %v917_v47 = vmul.f32 %v916_v13, %v914_v9 }
 0x239   : > { %v3578_v6 = vmul.f32 %v3559_v60, %v1166_v18  ;;  %v1210_v48 = vrot.slane %v1181_v35, 3  ;;  %vm1284_vm15 = vcmask 1043456   ;;  %v832_v53 = vsel %vm825_vm11, %v828_v3, %v831_v4  ;;  %v1250_v35 = vld [vmem:[#allocation2 + $0x18] sm:$0x1f]  ;;  %v1249_v3 = vld [vmem:[#allocation2 + $0x68] sm:$0xe0] }
 0x23a   : > { %4586 = vst [vmem:[#allocation14_spill] sm:$0xff] %v3573_v63  ;;  %v1211_v22 = vrot.slane %v1183_v21, 3  ;;  %v1213_v5 = vrot.slane %v1182_v23, 3  ;;  %v1214_v44 = vrot.slane %v1184_v30, 3  ;;  %v833_v34 = vsel %vm823_vm12, nan, %v832_v53 }
 0x23b   : > { %4587 = vst [vmem:[#allocation15_spill] sm:$0xff] %v3578_v6  ;;  %v918_v36 = vxor.u32 2147483648, %v917_v47  ;;  %v4492_v54 = vrot.slane %v3573_v63, 3  ;;  %v4490_v12 = vrot.slane %v3578_v6, 3  ;;  %v939_v13 = vand.u32 2147483647, %v833_v34 }
 0x23c   : > { %v1212_v43 = vsel %vm1199_vm13, %v1210_v48, %v1211_v22  ;;  %v1215_v28 = vsel %vm1199_vm13, %v1213_v5, %v1214_v44  ;;  %v3590_v25 = vrot.slane %v3426_v37, %v3429_v38  ;;  %v3609_v53 = vrot.slane %v3492_v17, %v3429_v38  ;;  %v1334_v34 = vld [vmem:[#allocation2 + $0x68] sm:$0xc0]  ;;  %v1865_v6 = vld [vmem:[#allocation2 + $0x38] sm:$0xe0] }
 0x23d   : > { %v919_v18 = vsel %vm836_vm0, %v918_v36, %v917_v47  ;;  %v1217_v11 = vsel %vm1199_vm13, %v1211_v22, %v4492_v54  ;;  %v1219_v10 = vsel %vm1199_vm13, %v1214_v44, %v4490_v12  ;;  %v1238_v9 = vadd.f32 %v1212_v43, %v1153_v15  ;;  %v1251_v47 = vld [vmem:[#allocation2 + $0x8] sm:$0x1f]  ;;  %v1333_v22 = vld [vmem:[#allocation2 + $0x20] sm:$0xc0]  ;;  %v1335_v43 = vld [vmem:[#allocation2 + $0x18] sm:$0x3f] }
 0x23e   : > { %v922_v23 = vsel %vm3413_vm4, %v3195_v19, %v919_v18  ;;  %v3605_v4 = vsel %vm517_vm14, %v939_v13, 0.0  ;;  %v1239_v21 = vadd.f32 %v1215_v28, %v1154_v29  ;;  %v1240_v30 = vadd.f32 %v1217_v11, %v1155_v1 }
 0x23f   : > { %vm1369_vm0 = vcmask 1042432   ;;  %2631 = vcosq.f32 %v922_v23  ;;  %v1241_v48 = vadd.f32 %v1219_v10, %v1156_v58  ;;  %v1266_v15 = vmul.f32 %v3590_v25, %v1248_v45 }
 0x240   : > { %2633 = vsinq.f32 %v922_v23  ;;  %v1268_v7 = vmul.f32 %v3590_v25, %v3446_v14  ;;  %v3615_v49 = vmul.f32 %v3590_v25, %v1250_v35  ;;  %v3619_v29 = vrot.slane %v3426_v37, %v3432_v56  ;;  %v1336_v35 = vld [vmem:[#allocation2 + $0x8] sm:$0x3f] }
 0x241   : > { %v1267_v1 = vmul.f32 %v3609_v53, %v1249_v3  ;;  %v1269_v58 = vmul.f32 %v3609_v53, %v3495_v57  ;;  %v3625_v5 = vmul.f32 %v3609_v53, %v1251_v47  ;;  %v1295_v44 = vrot.slane %v1266_v15, 4 }
 0x242   : > { %4588 = vst [vmem:[#allocation16_spill] sm:$0xff] %v3615_v49  ;;  %v1296_v36 = vrot.slane %v1268_v7, 4  ;;  %v4491_v13 = vrot.slane %v3615_v49, 4  ;;  %v3630_v28 = vrot.slane %v3492_v17, %v3432_v56  ;;  %v1351_v45 = vmul.f32 %v3619_v29, %v1333_v22 }
 0x243   : > { %4589 = vst [vmem:[#allocation17_spill] sm:$0xff] %v3625_v5  ;;  %v1298_v18 = vrot.slane %v1267_v1, 4  ;;  %v1299_v11 = vrot.slane %v1269_v58, 4  ;;  %v4495_v10 = vrot.slane %v3625_v5, 4  ;;  %v1353_v23 = vmul.f32 %v3619_v29, %v3446_v14  ;;  %v1699_v5 = vld [vmem:[#allocation2 + $0x58] sm:$0x7] }
 0x244   : > { %vm932_vm1 = vcmp.eq.s32.totalorder %v3488_v51, 2  ;;  %v1297_v3 = vsel %vm1284_vm15, %v1295_v44, %v1296_v36  ;;  %v1302_v47 = vsel %vm1284_vm15, %v1296_v36, %v4491_v13  ;;  %v1352_v15 = vmul.f32 %v3630_v28, %v1334_v34 }
 0x245   : > { %v1354_v22 = vmul.f32 %v3630_v28, %v3495_v57  ;;  %vm929_vm2 = vcmp.eq.s32.totalorder %v3488_v51, 0  ;;  %v1300_v7 = vsel %vm1284_vm15, %v1298_v18, %v1299_v11  ;;  %v1304_v1 = vsel %vm1284_vm15, %v1299_v11, %v4495_v10  ;;  %v1418_v11 = vld [vmem:[#allocation2 + $0x20] sm:$0x80] }
 0x246   : > { %v1323_v58 = vadd.f32 %v1297_v3, %v1238_v9  ;;  %v1325_v12 = vadd.f32 %v1302_v47, %v1240_v30  ;;  %vm1454_vm4 = vcmask 1041408   ;;  %vm928_vm5 = vcmp.lt.s32.totalorder %v3488_v51, 2  ;;  %v1419_v3 = vld [vmem:[#allocation2 + $0x68] sm:$0x80] }
 0x247   : > { %v1324_v44 = vadd.f32 %v1300_v7, %v1239_v21  ;;  %v1326_v36 = vadd.f32 %v1304_v1, %v1241_v48  ;;  %v3651_v34 = vmul.f32 %v3619_v29, %v1335_v43  ;;  %v3654_v13 = vmul.f32 %v3630_v28, %v1336_v35  ;;  %v1420_v35 = vld [vmem:[#allocation2 + $0x18] sm:$0x7f] }
 0x248   : > { %vm926_vm6 = vweird.f32 %v3195_v19  ;;  %v1380_v18 = vrot.slane %v1351_v45, 5  ;;  %v1381_v54 = vrot.slane %v1353_v23, 5  ;;  %v1383_v55 = vrot.slane %v1352_v15, 5  ;;  %v1421_v23 = vld [vmem:[#allocation2 + $0x8] sm:$0x7f] }
 0x249   : > { %4590 = vst [vmem:[#allocation18_spill] sm:$0xff] %v3651_v34  ;;  %4591 = vst [vmem:[#allocation19_spill] sm:$0xff] %v3654_v13  ;;  %v1384_v31 = vrot.slane %v1354_v22, 5  ;;  %v4498_v9 = vrot.slane %v3651_v34, 5  ;;  %v4499_v30 = vrot.slane %v3654_v13, 5  ;;  %v3661_v21 = vrot.slane %v3426_v37, %v3455_v2 }
 0x24a   : > { %v3665_v48 = vrot.slane %v3492_v17, %v3455_v2  ;;  %v1382_v43 = vsel %vm1369_vm0, %v1380_v18, %v1381_v54  ;;  %v3671_v47 = vrot.slane %v3426_v37, %v3486_v20  ;;  %v3675_v15 = vrot.slane %v3492_v17, %v3486_v20  ;;  %v1612_v19 = vld [vmem:[#allocation2 + $0x40] sm:$0xfc] }
 0x24b   : > { %v1385_v45 = vsel %vm1369_vm0, %v1383_v55, %v1384_v31  ;;  %vm518_vm7 = vcmp.le.f32.partialorder %v3171_v61, 1.0  ;;  %v1387_v22 = vsel %vm1369_vm0, %v1381_v54, %v4498_v9  ;;  %v1389_v55 = vsel %vm1369_vm0, %v1384_v31, %v4499_v30  ;;  %v3704_v30 = vld [vmem:[#allocation2 + $0x8] sm:$0xff] }
 0x24c   : > { %v1408_v7 = vadd.f32 %v1382_v43, %v1323_v58  ;;  %v1409_v1 = vadd.f32 %v1385_v45, %v1324_v44  ;;  %vm1527_vm9 = vcmask 1040384   ;;  %v1410_v18 = vadd.f32 %v1387_v22, %v1325_v12  ;;  %v2632_v40 = vpop.eup %2631  ;;  %v3696_v58 = vld [vmem:[#allocation2 + $0x18] sm:$0xff] }
 0x24d   : > { %v1411_v37 = vadd.f32 %v1389_v55, %v1326_v36  ;;  %v1436_v10 = vmul.f32 %v3661_v21, %v1418_v11  ;;  %v1437_v17 = vmul.f32 %v3665_v48, %v1419_v3  ;;  %v1438_v27 = vmul.f32 %v3661_v21, %v3446_v14  ;;  %v2634_v12 = vpop.eup %2633 }
 0x24e   : > { %v1439_v54 = vmul.f32 %v3665_v48, %v3495_v57  ;;  %v3691_v9 = vmul.f32 %v3661_v21, %v1420_v35  ;;  %v3694_v31 = vmul.f32 %v3665_v48, %v1421_v23  ;;  %v933_v44 = vxor.u32 2147483648, %v2632_v40 }
 0x24f   : > { %v1465_v36 = vrot.slane %v1436_v10, 6  ;;  %v1468_v11 = vrot.slane %v1437_v17, 6  ;;  %v1515_v3 = vmul.f32 %v3671_v47, %v3446_v14  ;;  %v930_v43 = vxor.u32 2147483648, %v2634_v12 }
 0x250   : > { %4592 = vst [vmem:[#allocation20_spill] sm:$0xff] %v3691_v9  ;;  %4593 = vst [vmem:[#allocation21_spill] sm:$0xff] %v3694_v31  ;;  %v1466_v45 = vrot.slane %v1438_v27, 6  ;;  %v1469_v22 = vrot.slane %v1439_v54, 6  ;;  %v4503_v55 = vrot.slane %v3691_v9, 6  ;;  %v934_v35 = vsel %vm932_vm1, %v933_v44, %v2634_v12 }
 0x251   : > { %v4506_v23 = vrot.slane %v3694_v31, 6  ;;  %v1516_v13 = vmul.f32 %v3675_v15, %v3495_v57  ;;  %v3710_v10 = vmul.f32 %v3671_v47, %v3696_v58  ;;  %v931_v14 = vsel %vm929_vm2, %v2632_v40, %v930_v43  ;;  %v1570_v9 = vld [vmem:[#allocation2 + $0x40] sm:$0xfe] }
 0x252   : > { %v1467_v27 = vsel %vm1454_vm4, %v1465_v36, %v1466_v45  ;;  %v1470_v17 = vsel %vm1454_vm4, %v1468_v11, %v1469_v22  ;;  %v1472_v54 = vsel %vm1454_vm4, %v1466_v45, %v4503_v55  ;;  %v935_v12 = vsel %vm928_vm5, %v931_v14, %v934_v35 }
 0x253   : > { %4594 = vst [vmem:[#allocation22_spill] sm:$0xff] %v3710_v10  ;;  %v1474_v57 = vsel %vm1454_vm4, %v1469_v22, %v4506_v23  ;;  %v1493_v44 = vadd.f32 %v1467_v27, %v1408_v7  ;;  %v1494_v34 = vadd.f32 %v1470_v17, %v1409_v1  ;;  %v936_v40 = vsel %vm926_vm6, nan, %v935_v12  ;;  %v1571_v27 = vld [vmem:[#allocation2 + $0x38] sm:$0xfe] }
 0x254   : > { %v1495_v43 = vadd.f32 %v1472_v54, %v1410_v18  ;;  %v1496_v36 = vadd.f32 %v1474_v57, %v1411_v37  ;;  %v3728_v11 = vmul.f32 %v3675_v15, %v3704_v30  ;;  %v940_v45 = vand.u32 2147483647, %v936_v40  ;;  %v1613_v57 = vld [vmem:[#allocation2 + $0x38] sm:$0xfc]  ;;  %v1614_v40 = vld [vmem:[#allocation2 + $0x78] sm:$0x3] }
 0x255   : > { %v1534_v55 = vrot.slane %v1515_v3, 7  ;;  %v1535_v51 = vrot.slane %v1516_v13, 7  ;;  %v4504_v35 = vrot.slane %v3710_v10, 7  ;;  %v3734_v7 = vrot.slane %v3605_v4, %v3215_v33 }
 0x256   : > { %4595 = vst [vmem:[#allocation23_spill] sm:$0xff] %v3728_v11  ;;  %v4505_v14 = vrot.slane %v3728_v11, 7  ;;  %v3738_v1 = vrot.slane %v3605_v4, %v3209_v8  ;;  %v3742_v18 = vrot.slane %v3605_v4, %v3221_v42  ;;  %v3746_v13 = vsel %vm518_vm7, %v940_v45, 0.0 }
 0x257   : > { %v1537_v37 = vsel %vm1527_vm9, %v1534_v55, %v4504_v35  ;;  %v1558_v3 = vadd.f32 %v1534_v55, %v1493_v44  ;;  %v1559_v22 = vadd.f32 %v1535_v51, %v1494_v34  ;;  %v3756_v12 = vrot.slane %v3746_v13, %v3215_v33  ;;  %v1615_v55 = vld [vmem:[#allocation2 + $0x58] sm:$0x3] }
 0x258   : > { %v1539_v17 = vsel %vm1527_vm9, %v1535_v51, %v4505_v14  ;;  %v1560_v54 = vadd.f32 %v1537_v37, %v1495_v43  ;;  %v1590_v61 = vmul.f32 %v3734_v7, %v1570_v9  ;;  %v1592_v35 = vmul.f32 %v3734_v7, %v3696_v58  ;;  %v1696_v14 = vld [vmem:[#allocation2 + $0x40] sm:$0xf8] }
 0x259   : > { %v1561_v45 = vadd.f32 %v1539_v17, %v1496_v36  ;;  %v3763_v34 = vrot.slane %v3746_v13, %v3209_v8  ;;  %v1630_v44 = vmul.f32 %v3738_v1, %v1612_v19  ;;  %v1591_v43 = vmul.f32 %v3756_v12, %v1571_v27 }
 0x25a   : > { %v1593_v33 = vmul.f32 %v3756_v12, %v3704_v30  ;;  %v1602_v51 = vadd.f32 %v1590_v61, %v1558_v3  ;;  %v1632_v9 = vmul.f32 %v3738_v1, %v3696_v58  ;;  %v1604_v36 = vadd.f32 %v1592_v35, %v1560_v54  ;;  %v1698_v3 = vld [vmem:[#allocation2 + $0x78] sm:$0x7] }
 0x25b   : > { %v1631_v37 = vmul.f32 %v3763_v34, %v1613_v57  ;;  %v1633_v17 = vmul.f32 %v3763_v34, %v3704_v30  ;;  %v3775_v8 = vmul.f32 %v3738_v1, %v1614_v40  ;;  %v1603_v19 = vadd.f32 %v1591_v43, %v1559_v22  ;;  %v1697_v57 = vld [vmem:[#allocation2 + $0x38] sm:$0xf8] }
 0x25c   : > { %v1605_v23 = vadd.f32 %v1593_v33, %v1561_v45  ;;  %v3778_v27 = vmul.f32 %v3763_v34, %v1615_v55  ;;  %v1658_v11 = vrot.slane %v1630_v44, 1  ;;  %v1659_v61 = vrot.slane %v1632_v9, 1 }
 0x25d   : > { %4596 = vst [vmem:[#allocation24_spill] sm:$0xff] %v3775_v8  ;;  %v1661_v10 = vrot.slane %v1631_v37, 1  ;;  %v1662_v31 = vrot.slane %v1633_v17, 1  ;;  %v4512_v35 = vrot.slane %v3775_v8, 1  ;;  %v3784_v40 = vrot.slane %v3746_v13, %v3221_v42 }
 0x25e   : > { %4597 = vst [vmem:[#allocation25_spill] sm:$0xff] %v3778_v27  ;;  %v4514_v54 = vrot.slane %v3778_v27, 1  ;;  %v1714_v22 = vmul.f32 %v3742_v18, %v1696_v14  ;;  %v1716_v45 = vmul.f32 %v3742_v18, %v3696_v58  ;;  %v1660_v55 = vsel %vm1029_vm8, %v1658_v11, %v1659_v61 }
 0x25f   : > { %v1663_v44 = vsel %vm1029_vm8, %v1661_v10, %v1662_v31  ;;  %v1665_v43 = vsel %vm1029_vm8, %v1659_v61, %v4512_v35  ;;  %v3795_v33 = vmul.f32 %v3742_v18, %v1698_v3  ;;  %v1686_v9 = vadd.f32 %v1660_v55, %v1602_v51  ;;  %v1780_v61 = vld [vmem:[#allocation2 + $0x40] sm:$0xf0]  ;;  %v1783_v55 = vld [vmem:[#allocation2 + $0x58] sm:$0xf] }
 0x260   : > { %v1667_v42 = vsel %vm1029_vm8, %v1662_v31, %v4514_v54  ;;  %v1687_v14 = vadd.f32 %v1663_v44, %v1603_v19  ;;  %v1688_v37 = vadd.f32 %v1665_v43, %v1604_v36  ;;  %v1715_v49 = vmul.f32 %v3784_v40, %v1697_v57  ;;  %v1781_v19 = vld [vmem:[#allocation2 + $0x38] sm:$0xf0] }
 0x261   : > { %4598 = vst [vmem:[#allocation26_spill] sm:$0xff] %v3795_v33  ;;  %v1689_v17 = vadd.f32 %v1667_v42, %v1605_v23  ;;  %v1717_v10 = vmul.f32 %v3784_v40, %v3704_v30  ;;  %v3804_v11 = vmul.f32 %v3784_v40, %v1699_v5  ;;  %v1742_v35 = vrot.slane %v1714_v22, 2 }
 0x262   : > { %v1743_v3 = vrot.slane %v1716_v45, 2  ;;  %v4516_v8 = vrot.slane %v3795_v33, 2  ;;  %v3809_v31 = vrot.slane %v3605_v4, %v3422_v26  ;;  %v1745_v51 = vrot.slane %v1715_v49, 2  ;;  %v1782_v45 = vld [vmem:[#allocation2 + $0x78] sm:$0xf] }
 0x263   : > { %4599 = vst [vmem:[#allocation27_spill] sm:$0xff] %v3804_v11  ;;  %v1746_v36 = vrot.slane %v1717_v10, 2  ;;  %v4520_v23 = vrot.slane %v3804_v11, 2  ;;  %v3814_v57 = vrot.slane %v3746_v13, %v3422_v26  ;;  %v1864_v11 = vld [vmem:[#allocation2 + $0x40] sm:$0xe0]  ;;  %vm2332_vm10 = vcmask 130049  }
 0x264   : > { %v1744_v5 = vsel %vm1114_vm3, %v1742_v35, %v1743_v3  ;;  %v1749_v22 = vsel %vm1114_vm3, %v1743_v3, %v4516_v8  ;;  %v1798_v44 = vmul.f32 %v3809_v31, %v1780_v61  ;;  %v1800_v49 = vmul.f32 %v3809_v31, %v3696_v58 }
 0x265   : > { %v1747_v43 = vsel %vm1114_vm3, %v1745_v51, %v1746_v36  ;;  %v1751_v26 = vsel %vm1114_vm3, %v1746_v36, %v4520_v23  ;;  %v1770_v42 = vadd.f32 %v1744_v5, %v1686_v9  ;;  %v1772_v10 = vadd.f32 %v1749_v22, %v1688_v37  ;;  %v1866_v22 = vld [vmem:[#allocation2 + $0x78] sm:$0x1f]  ;;  %v1948_v23 = vld [vmem:[#allocation2 + $0x40] sm:$0xc0] }
 0x266   : > { %v1771_v35 = vadd.f32 %v1747_v43, %v1687_v14  ;;  %v1773_v54 = vadd.f32 %v1751_v26, %v1689_v17  ;;  %v1799_v33 = vmul.f32 %v3814_v57, %v1781_v19  ;;  %v1801_v3 = vmul.f32 %v3814_v57, %v3704_v30 }
 0x267   : > { %v3831_v61 = vmul.f32 %v3809_v31, %v1782_v45  ;;  %v3834_v8 = vmul.f32 %v3814_v57, %v1783_v55  ;;  %v1826_v51 = vrot.slane %v1798_v44, 3  ;;  %v1827_v27 = vrot.slane %v1800_v49, 3  ;;  %v1867_v44 = vld [vmem:[#allocation2 + $0x58] sm:$0x1f] }
 0x268   : > { %v1829_v36 = vrot.slane %v1799_v33, 3  ;;  %v1830_v9 = vrot.slane %v1801_v3, 3  ;;  %v3838_v14 = vrot.slane %v3605_v4, %v3429_v38  ;;  %v3842_v37 = vrot.slane %v3746_v13, %v3429_v38 }
 0x269   : > { %4600 = vst [vmem:[#allocation28_spill] sm:$0xff] %v3831_v61  ;;  %4601 = vst [vmem:[#allocation29_spill] sm:$0xff] %v3834_v8  ;;  %v1828_v17 = vsel %vm1199_vm13, %v1826_v51, %v1827_v27  ;;  %v4521_v19 = vrot.slane %v3831_v61, 3  ;;  %v4523_v5 = vrot.slane %v3834_v8, 3  ;;  %v3849_v45 = vrot.slane %v3605_v4, %v3432_v56 }
 0x26a   : > { %v1831_v33 = vsel %vm1199_vm13, %v1829_v36, %v1830_v9  ;;  %v1854_v55 = vadd.f32 %v1828_v17, %v1770_v42  ;;  %v1882_v49 = vmul.f32 %v3838_v14, %v1864_v11  ;;  %v1883_v38 = vmul.f32 %v3842_v37, %v1865_v6  ;;  %v1950_v17 = vld [vmem:[#allocation2 + $0x78] sm:$0x3f] }
 0x26b   : > { %v1833_v43 = vsel %vm1199_vm13, %v1827_v27, %v4521_v19  ;;  %v1835_v26 = vsel %vm1199_vm13, %v1830_v9, %v4523_v5  ;;  %v1855_v3 = vadd.f32 %v1831_v33, %v1771_v35  ;;  %v1884_v51 = vmul.f32 %v3838_v14, %v3696_v58  ;;  %v1949_v35 = vld [vmem:[#allocation2 + $0x38] sm:$0xc0] }
 0x26c   : > { %v1856_v36 = vadd.f32 %v1833_v43, %v1772_v10  ;;  %v1857_v42 = vadd.f32 %v1835_v26, %v1773_v54  ;;  %v1885_v11 = vmul.f32 %v3842_v37, %v3704_v30  ;;  %v3865_v6 = vmul.f32 %v3838_v14, %v1866_v22  ;;  %v1951_v26 = vld [vmem:[#allocation2 + $0x58] sm:$0x3f] }
 0x26d   : > { %v3868_v27 = vmul.f32 %v3842_v37, %v1867_v44  ;;  %v1910_v19 = vrot.slane %v1882_v49, 4  ;;  %v1911_v8 = vrot.slane %v1884_v51, 4  ;;  %v1913_v9 = vrot.slane %v1883_v38, 4 }
 0x26e   : > { %4602 = vst [vmem:[#allocation30_spill] sm:$0xff] %v3865_v6  ;;  %v1914_v33 = vrot.slane %v1885_v11, 4  ;;  %v4530_v5 = vrot.slane %v3865_v6, 4  ;;  %v3873_v54 = vrot.slane %v3746_v13, %v3432_v56  ;;  %v1966_v10 = vmul.f32 %v3849_v45, %v1948_v23 }
 0x26f   : > { %4603 = vst [vmem:[#allocation31_spill] sm:$0xff] %v3868_v27  ;;  %v1912_v22 = vsel %vm1284_vm15, %v1910_v19, %v1911_v8  ;;  %v4529_v43 = vrot.slane %v3868_v27, 4  ;;  %v1968_v44 = vmul.f32 %v3849_v45, %v3696_v58  ;;  %v3881_v49 = vmul.f32 %v3849_v45, %v1950_v17 }
 0x270   : > { %v1915_v38 = vsel %vm1284_vm15, %v1913_v9, %v1914_v33  ;;  %v1917_v56 = vsel %vm1284_vm15, %v1911_v8, %v4530_v5  ;;  %v1938_v51 = vadd.f32 %v1912_v22, %v1854_v55  ;;  %v1967_v23 = vmul.f32 %v3873_v54, %v1949_v35  ;;  %v2033_v22 = vld [vmem:[#allocation2 + $0x38] sm:$0x80] }
 0x271   : > { %4604 = vst [vmem:[#allocation32_spill] sm:$0xff] %v3881_v49  ;;  %v1919_v19 = vsel %vm1284_vm15, %v1914_v33, %v4529_v43  ;;  %v1939_v11 = vadd.f32 %v1915_v38, %v1855_v3  ;;  %v1940_v61 = vadd.f32 %v1917_v56, %v1856_v36  ;;  %v1969_v63 = vmul.f32 %v3873_v54, %v3704_v30  ;;  %v2035_v56 = vld [vmem:[#allocation2 + $0x58] sm:$0x7f] }
 0x272   : > { %v1941_v17 = vadd.f32 %v1919_v19, %v1857_v42  ;;  %v3894_v52 = vmul.f32 %v3873_v54, %v1951_v26  ;;  %v1994_v9 = vrot.slane %v1966_v10, 5  ;;  %v1995_v6 = vrot.slane %v1968_v44, 5  ;;  %v2034_v42 = vld [vmem:[#allocation2 + $0x78] sm:$0x7f] }
 0x273   : > { %v1997_v8 = vrot.slane %v1967_v23, 5  ;;  %v1998_v55 = vrot.slane %v1969_v63, 5  ;;  %v4532_v35 = vrot.slane %v3881_v49, 5  ;;  %v3899_v33 = vrot.slane %v3605_v4, %v3455_v2 }
 0x274   : > { %4605 = vst [vmem:[#allocation33_spill] sm:$0xff] %v3894_v52  ;;  %v1996_v3 = vsel %vm1369_vm0, %v1994_v9, %v1995_v6  ;;  %v4531_v36 = vrot.slane %v3894_v52, 5  ;;  %v3905_v26 = vrot.slane %v3746_v13, %v3455_v2  ;;  %v3909_v10 = vrot.slane %v3605_v4, %v3486_v20 }
 0x275   : > { %v1999_v63 = vsel %vm1369_vm0, %v1997_v8, %v1998_v55  ;;  %v2001_v44 = vsel %vm1369_vm0, %v1995_v6, %v4532_v35  ;;  %v2022_v38 = vadd.f32 %v1996_v3, %v1938_v51  ;;  %v2050_v23 = vmul.f32 %v3899_v33, %v2032_v0  ;;  %v2114_v51 = vld [vmem:[#allocation2 + $0x78] sm:$0xff] }
 0x276   : > { %v2003_v19 = vsel %vm1369_vm0, %v1998_v55, %v4531_v36  ;;  %v2023_v2 = vadd.f32 %v1999_v63, %v1939_v11  ;;  %v2024_v9 = vadd.f32 %v2001_v44, %v1940_v61  ;;  %v2051_v43 = vmul.f32 %v3905_v26, %v2033_v22  ;;  %v2115_v0 = vld [vmem:[#allocation2 + $0x58] sm:$0xff] }
 0x277   : > { %v2025_v4 = vadd.f32 %v2003_v19, %v1941_v17  ;;  %v2052_v8 = vmul.f32 %v3899_v33, %v3696_v58  ;;  %v2053_v5 = vmul.f32 %v3905_v26, %v3704_v30  ;;  %v3925_v6 = vmul.f32 %v3899_v33, %v2034_v42 }
 0x278   : > { %v3928_v3 = vmul.f32 %v3905_v26, %v2035_v56  ;;  %v2078_v55 = vrot.slane %v2050_v23, 6  ;;  %v2081_v11 = vrot.slane %v2051_v43, 6  ;;  %v3932_v61 = vrot.slane %v3746_v13, %v3486_v20  ;;  %v945_v23 = vld [vmem:[#allocation2] sm:$0xfe] }
 0x279   : > { %4606 = vst [vmem:[#allocation34_spill] sm:$0xff] %v3925_v6  ;;  %v2079_v17 = vrot.slane %v2052_v8, 6  ;;  %v2082_v22 = vrot.slane %v2053_v5, 6  ;;  %v4536_v63 = vrot.slane %v3925_v6, 6  ;;  %v2128_v44 = vmul.f32 %v3909_v10, %v3696_v58  ;;  %v946_v8 = vld [vmem:[#allocation2 + $0x50] sm:$0xfe] }
 0x27a   : > { %4607 = vst [vmem:[#allocation35_spill] sm:$0xff] %v3928_v3  ;;  %v4540_v42 = vrot.slane %v3928_v3, 6  ;;  %v2129_v19 = vmul.f32 %v3932_v61, %v3704_v30  ;;  %v3941_v56 = vmul.f32 %v3909_v10, %v2114_v51  ;;  %v3944_v43 = vmul.f32 %v3932_v61, %v2115_v0  ;;  %v989_v0 = vld [vmem:[#allocation2] sm:$0xfc] }
 0x27b   : > { %v2080_v20 = vsel %vm1454_vm4, %v2078_v55, %v2079_v17  ;;  %v2083_v13 = vsel %vm1454_vm4, %v2081_v11, %v2082_v22  ;;  %v2085_v5 = vsel %vm1454_vm4, %v2079_v17, %v4536_v63  ;;  %v2146_v58 = vrot.slane %v2128_v44, 7  ;;  %v3956_v6 = vld [vmem:[#allocation2 + $0x60] sm:$0xff]  ;;  %v990_v17 = vld [vmem:[#allocation2 + $0x50] sm:$0xfc] }
 0x27c   : > { %4608 = vst [vmem:[#allocation36_spill] sm:$0xff] %v3941_v56  ;;  %4609 = vst [vmem:[#allocation37_spill] sm:$0xff] %v3944_v43  ;;  %v2087_v30 = vsel %vm1454_vm4, %v2082_v22, %v4540_v42  ;;  %v2106_v51 = vadd.f32 %v2080_v20, %v2022_v38  ;;  %v2107_v36 = vadd.f32 %v2083_v13, %v2023_v2  ;;  %v2147_v49 = vrot.slane %v2129_v19, 7  ;;  %v3958_v63 = vld [vmem:[#allocation2 + $0x10] sm:$0xff]  ;;  %v991_v2 = vld [vmem:[#allocation2 + $0x48] sm:$0x3] }
 0x27d   : > { %v2108_v35 = vadd.f32 %v2085_v5, %v2024_v9  ;;  %v2109_v52 = vadd.f32 %v2087_v30, %v2025_v4  ;;  %v4538_v55 = vrot.slane %v3941_v56, 7  ;;  %v4539_v11 = vrot.slane %v3944_v43, 7  ;;  %v992_v13 = vld [vmem:[#allocation2 + $0x28] sm:$0x3] }
 0x27e   : > { %v2170_v44 = vadd.f32 %v2146_v58, %v2106_v51  ;;  %v965_v3 = vmul.f32 %v3436_v39, %v945_v23  ;;  %v966_v22 = vmul.f32 %v3499_v24, %v946_v8  ;;  %v967_v38 = vmul.f32 %v3436_v39, %v3956_v6 }
 0x27f   : > { %v2149_v9 = vsel %vm1527_vm9, %v2146_v58, %v4538_v55  ;;  %v2151_v4 = vsel %vm1527_vm9, %v2147_v49, %v4539_v11  ;;  %v2171_v19 = vadd.f32 %v2147_v49, %v2107_v36  ;;  %v968_v20 = vmul.f32 %v3499_v24, %v3958_v63  ;;  %v1074_v36 = vld [vmem:[#allocation2] sm:$0xf8]  ;;  %v1075_v11 = vld [vmem:[#allocation2 + $0x50] sm:$0xf8] }
 0x280   : > { %v2172_v5 = vadd.f32 %v2149_v9, %v2108_v35  ;;  %v2173_v23 = vadd.f32 %v2151_v4, %v2109_v52  ;;  %v1005_v8 = vmul.f32 %v3440_v50, %v989_v0  ;;  %v1006_v30 = vmul.f32 %v3503_v41, %v990_v17 }
 0x281   : > { %v3974_v51 = vadd.f32 %v2171_v19, %v2170_v44  ;;  %v1007_v58 = vmul.f32 %v3440_v50, %v3956_v6  ;;  %v1008_v55 = vmul.f32 %v3503_v41, %v3958_v63  ;;  %v3981_v49 = vmul.f32 %v3440_v50, %v991_v2  ;;  %v1076_v2 = vld [vmem:[#allocation2 + $0x48] sm:$0x7] }
 0x282   : > { %v3983_v42 = vadd.f32 %v2173_v23, %v2172_v5  ;;  %v3986_v52 = vmul.f32 %v3503_v41, %v992_v13  ;;  %v1030_v35 = vrot.slane %v1005_v8, 1  ;;  %v1033_v0 = vrot.slane %v1006_v30, 1 }
 0x283   : > { %4610 = vst [vmem:[#allocation38_spill] sm:$0xff] %v3974_v51  ;;  %v2193_v17 = vrot.slane %v3974_v51, 1  ;;  %v1031_v44 = vrot.slane %v1007_v58, 1  ;;  %v1034_v9 = vrot.slane %v1008_v55, 1  ;;  %v4542_v4 = vrot.slane %v3981_v49, 1 }
 0x284   : > { %4611 = vst [vmem:[#allocation39_spill] sm:$0xff] %v3983_v42  ;;  %v4546_v19 = vrot.slane %v3983_v42, 1  ;;  %v4547_v50 = vrot.slane %v3986_v52, 1  ;;  %v1090_v43 = vmul.f32 %v3452_v62, %v1074_v36  ;;  %v1091_v5 = vmul.f32 %v3508_v32, %v1075_v11  ;;  %v1077_v55 = vld [vmem:[#allocation2 + $0x28] sm:$0x7] }
 0x285   : > { %v1032_v41 = vsel %vm1029_vm8, %v1030_v35, %v1031_v44  ;;  %v1035_v13 = vsel %vm1029_vm8, %v1033_v0, %v1034_v9  ;;  %v1037_v23 = vsel %vm1029_vm8, %v1031_v44, %v4542_v4  ;;  %v1092_v8 = vmul.f32 %v3452_v62, %v3956_v6  ;;  %v1159_v35 = vld [vmem:[#allocation2] sm:$0xf0]  ;;  %v1160_v0 = vld [vmem:[#allocation2 + $0x50] sm:$0xf0] }
 0x286   : > { %v2195_v30 = vsel %vm1029_vm8, %v2193_v17, %v4546_v19  ;;  %v1039_v11 = vsel %vm1029_vm8, %v1034_v9, %v4547_v50  ;;  %v1062_v58 = vadd.f32 %v1032_v41, %v965_v3  ;;  %v1063_v36 = vadd.f32 %v1035_v13, %v966_v22  ;;  %v1161_v22 = vld [vmem:[#allocation2 + $0x48] sm:$0xf] }
 0x287   : > { %2206 = vrot.lane.b32.xlu1 %v2195_v30, %s2804_s19  ;;  %v1064_v44 = vadd.f32 %v1037_v23, %v967_v38  ;;  %v1065_v4 = vadd.f32 %v1039_v11, %v968_v20  ;;  %v1093_v51 = vmul.f32 %v3508_v32, %v3958_v63  ;;  %v4011_v42 = vmul.f32 %v3452_v62, %v1076_v2  ;;  %v1162_v50 = vld [vmem:[#allocation2 + $0x28] sm:$0xf] }
 0x288   : > { %v4014_v17 = vmul.f32 %v3508_v32, %v1077_v55  ;;  %v1115_v19 = vrot.slane %v1090_v43, 2  ;;  %v1116_v9 = vrot.slane %v1092_v8, 2  ;;  %v1118_v3 = vrot.slane %v1091_v5, 2  ;;  %v1244_v8 = vld [vmem:[#allocation2] sm:$0xe0] }
 0x289   : > { %4612 = vst [vmem:[#allocation40_spill] sm:$0xff] %v4011_v42  ;;  %v1119_v41 = vrot.slane %v1093_v51, 2  ;;  %v4552_v13 = vrot.slane %v4011_v42, 2  ;;  %v1175_v38 = vmul.f32 %v3550_v46, %v1159_v35  ;;  %v1176_v20 = vmul.f32 %v3559_v60, %v1160_v0  ;;  %v1245_v0 = vld [vmem:[#allocation2 + $0x50] sm:$0xe0] }
 0x28a   : > { %v1117_v23 = vsel %vm1114_vm3, %v1115_v19, %v1116_v9  ;;  %v4551_v62 = vrot.slane %v4014_v17, 2  ;;  %v1177_v32 = vmul.f32 %v3550_v46, %v3956_v6  ;;  %v1178_v43 = vmul.f32 %v3559_v60, %v3958_v63 }
 0x28b   : > { %v1120_v2 = vsel %vm1114_vm3, %v1118_v3, %v1119_v41  ;;  %v1122_v51 = vsel %vm1114_vm3, %v1116_v9, %v4552_v13  ;;  %v1147_v5 = vadd.f32 %v1117_v23, %v1062_v58  ;;  %v4030_v55 = vmul.f32 %v3550_v46, %v1161_v22  ;;  %v1246_v22 = vld [vmem:[#allocation2 + $0x48] sm:$0x1f] }
 0x28c   : > { %v1124_v19 = vsel %vm1114_vm3, %v1119_v41, %v4551_v62  ;;  %v1148_v30 = vadd.f32 %v1120_v2, %v1063_v36  ;;  %v1149_v11 = vadd.f32 %v1122_v51, %v1064_v44  ;;  %v4036_v35 = vmul.f32 %v3559_v60, %v1162_v50  ;;  %v1247_v36 = vld [vmem:[#allocation2 + $0x28] sm:$0x1f] }
 0x28d   : > { %v1150_v3 = vadd.f32 %v1124_v19, %v1065_v4  ;;  %v1200_v56 = vrot.slane %v1175_v38, 3  ;;  %v1201_v27 = vrot.slane %v1177_v32, 3  ;;  %v1203_v42 = vrot.slane %v1176_v20, 3  ;;  %v1329_v32 = vld [vmem:[#allocation2] sm:$0xc0] }
 0x28e   : > { %4613 = vst [vmem:[#allocation41_spill] sm:$0xff] %v4036_v35  ;;  %v1204_v9 = vrot.slane %v1178_v43, 3  ;;  %v4553_v58 = vrot.slane %v4030_v55, 3  ;;  %v4564_v46 = vrot.slane %v4036_v35, 3  ;;  %v1260_v23 = vmul.f32 %v3590_v25, %v1244_v8  ;;  %v1330_v43 = vld [vmem:[#allocation2 + $0x50] sm:$0xc0] }
 0x28f   : > { %v1202_v41 = vsel %vm1199_vm13, %v1200_v56, %v1201_v27  ;;  %v1261_v44 = vmul.f32 %v3609_v53, %v1245_v0  ;;  %v1262_v60 = vmul.f32 %v3590_v25, %v3956_v6  ;;  %v1263_v4 = vmul.f32 %v3609_v53, %v3958_v63 }
 0x290   : > { %v1205_v50 = vsel %vm1199_vm13, %v1203_v42, %v1204_v9  ;;  %v1207_v38 = vsel %vm1199_vm13, %v1201_v27, %v4553_v58  ;;  %v1209_v20 = vsel %vm1199_vm13, %v1204_v9, %v4564_v46  ;;  %v1232_v56 = vadd.f32 %v1202_v41, %v1147_v5  ;;  %v1331_v27 = vld [vmem:[#allocation2 + $0x48] sm:$0x3f] }
 0x291   : > { %v1233_v2 = vadd.f32 %v1205_v50, %v1148_v30  ;;  %v1234_v51 = vadd.f32 %v1207_v38, %v1149_v11  ;;  %v1235_v8 = vadd.f32 %v1209_v20, %v1150_v3  ;;  %v4055_v19 = vmul.f32 %v3590_v25, %v1246_v22  ;;  %v1332_v9 = vld [vmem:[#allocation2 + $0x28] sm:$0x3f]  ;;  %v1415_v20 = vld [vmem:[#allocation2 + $0x50] sm:$0x80] }
 0x292   : > { %v4058_v0 = vmul.f32 %v3609_v53, %v1247_v36  ;;  %v1285_v42 = vrot.slane %v1260_v23, 4  ;;  %v1286_v62 = vrot.slane %v1262_v60, 4  ;;  %v1288_v13 = vrot.slane %v1261_v44, 4  ;;  %v1414_v44 = vld [vmem:[#allocation2] sm:$0x80] }
 0x293   : > { %v1289_v58 = vrot.slane %v1263_v4, 4  ;;  %v4563_v35 = vrot.slane %v4055_v19, 4  ;;  %v1345_v5 = vmul.f32 %v3619_v29, %v1329_v32  ;;  %v1346_v30 = vmul.f32 %v3630_v28, %v1330_v43 }
 0x294   : > { %v1287_v11 = vsel %vm1284_vm15, %v1285_v42, %v1286_v62  ;;  %v4556_v25 = vrot.slane %v4058_v0, 4  ;;  %v1347_v53 = vmul.f32 %v3619_v29, %v3956_v6  ;;  %v1348_v3 = vmul.f32 %v3630_v28, %v3958_v63 }
 0x295   : > { %v1290_v22 = vsel %vm1284_vm15, %v1288_v13, %v1289_v58  ;;  %v1292_v23 = vsel %vm1284_vm15, %v1286_v62, %v4563_v35  ;;  %v1317_v41 = vadd.f32 %v1287_v11, %v1232_v56  ;;  %v4074_v36 = vmul.f32 %v3619_v29, %v1331_v27  ;;  %v1416_v27 = vld [vmem:[#allocation2 + $0x48] sm:$0x7f] }
 0x296   : > { %v1294_v60 = vsel %vm1284_vm15, %v1289_v58, %v4556_v25  ;;  %v1318_v4 = vadd.f32 %v1290_v22, %v1233_v2  ;;  %v1319_v50 = vadd.f32 %v1292_v23, %v1234_v51  ;;  %v4080_v38 = vmul.f32 %v3630_v28, %v1332_v9  ;;  %v1417_v2 = vld [vmem:[#allocation2 + $0x28] sm:$0x7f] }
 0x297   : > { %v1320_v13 = vadd.f32 %v1294_v60, %v1235_v8  ;;  %v1370_v32 = vrot.slane %v1345_v5, 5  ;;  %v1371_v43 = vrot.slane %v1347_v53, 5  ;;  %v1373_v42 = vrot.slane %v1346_v30, 5  ;;  %v4101_v60 = vld [vmem:[#allocation2 + $0x48] sm:$0xff] }
 0x298   : > { %v1374_v62 = vrot.slane %v1348_v3, 5  ;;  %v4555_v56 = vrot.slane %v4074_v36, 5  ;;  %v4562_v29 = vrot.slane %v4080_v38, 5  ;;  %v1430_v11 = vmul.f32 %v3661_v21, %v1414_v44 }
 0x299   : > { %v1372_v58 = vsel %vm1369_vm0, %v1370_v32, %v1371_v43  ;;  %v1431_v51 = vmul.f32 %v3665_v48, %v1415_v20  ;;  %v1432_v28 = vmul.f32 %v3661_v21, %v3956_v6  ;;  %v1433_v8 = vmul.f32 %v3665_v48, %v3958_v63  ;;  %v4103_v20 = vld [vmem:[#allocation2 + $0x28] sm:$0xff] }
 0x29a   : > { %v1375_v9 = vsel %vm1369_vm0, %v1373_v42, %v1374_v62  ;;  %v1377_v5 = vsel %vm1369_vm0, %v1371_v43, %v4555_v56  ;;  %v1379_v30 = vsel %vm1369_vm0, %v1374_v62, %v4562_v29  ;;  %v1402_v53 = vadd.f32 %v1372_v58, %v1317_v41  ;;  %v1564_v58 = vld [vmem:[#allocation2 + $0x60] sm:$0xfe] }
 0x29b   : > { %v1403_v3 = vadd.f32 %v1375_v9, %v1318_v4  ;;  %v1404_v22 = vadd.f32 %v1377_v5, %v1319_v50  ;;  %v1405_v23 = vadd.f32 %v1379_v30, %v1320_v13  ;;  %v4099_v44 = vmul.f32 %v3661_v21, %v1416_v27  ;;  %v1608_v9 = vld [vmem:[#allocation2 + $0x60] sm:$0xfc] }
 0x29c   : > { %v4106_v32 = vmul.f32 %v3665_v48, %v1417_v2  ;;  %v1455_v42 = vrot.slane %v1430_v11, 6  ;;  %v1456_v43 = vrot.slane %v1432_v28, 6  ;;  %v1458_v56 = vrot.slane %v1431_v51, 6  ;;  %v1565_v2 = vld [vmem:[#allocation2 + $0x10] sm:$0xfe] }
 0x29d   : > { %v1459_v25 = vrot.slane %v1433_v8, 6  ;;  %v4560_v62 = vrot.slane %v4099_v44, 6  ;;  %v1511_v41 = vmul.f32 %v3671_v47, %v3956_v6  ;;  %v1512_v21 = vmul.f32 %v3675_v15, %v3958_v63 }
 0x29e   : > { %v1457_v4 = vsel %vm1454_vm4, %v1455_v42, %v1456_v43  ;;  %v4559_v50 = vrot.slane %v4106_v32, 6  ;;  %v4117_v48 = vmul.f32 %v3671_v47, %v4101_v60  ;;  %v4121_v13 = vmul.f32 %v3675_v15, %v4103_v20 }
 0x29f   : > { %v1460_v27 = vsel %vm1454_vm4, %v1458_v56, %v1459_v25  ;;  %v1462_v6 = vsel %vm1454_vm4, %v1456_v43, %v4560_v62  ;;  %v1487_v11 = vadd.f32 %v1457_v4, %v1402_v53  ;;  %v1528_v63 = vrot.slane %v1511_v41, 7  ;;  %v1609_v4 = vld [vmem:[#allocation2 + $0x10] sm:$0xfc] }
 0x2a0   : > { %v1464_v51 = vsel %vm1454_vm4, %v1459_v25, %v4559_v50  ;;  %v1488_v47 = vadd.f32 %v1460_v27, %v1403_v3  ;;  %v1489_v28 = vadd.f32 %v1462_v6, %v1404_v22  ;;  %v1529_v8 = vrot.slane %v1512_v21, 7  ;;  %v1610_v25 = vld [vmem:[#allocation2 + $0x30] sm:$0x3] }
 0x2a1   : > { %v1490_v15 = vadd.f32 %v1464_v51, %v1405_v23  ;;  %v4558_v5 = vrot.slane %v4117_v48, 7  ;;  %v4557_v56 = vrot.slane %v4121_v13, 7  ;;  %v1552_v30 = vadd.f32 %v1528_v63, %v1487_v11  ;;  %v1611_v21 = vld [vmem:[#allocation2 + $0x70] sm:$0x3] }
 0x2a2   : > { %v1553_v42 = vadd.f32 %v1529_v8, %v1488_v47  ;;  %v1584_v53 = vmul.f32 %v3734_v7, %v1564_v58  ;;  %v1585_v43 = vmul.f32 %v3756_v12, %v1565_v2  ;;  %v1586_v41 = vmul.f32 %v3734_v7, %v4101_v60 }
 0x2a3   : > { %v1531_v3 = vsel %vm1527_vm9, %v1528_v63, %v4558_v5  ;;  %v1533_v22 = vsel %vm1527_vm9, %v1529_v8, %v4557_v56  ;;  %v1587_v23 = vmul.f32 %v3756_v12, %v4103_v20  ;;  %v1624_v27 = vmul.f32 %v3738_v1, %v1608_v9  ;;  %v1692_v56 = vld [vmem:[#allocation2 + $0x60] sm:$0xf8]  ;;  %v1693_v5 = vld [vmem:[#allocation2 + $0x10] sm:$0xf8] }
 0x2a4   : > { %v1554_v6 = vadd.f32 %v1531_v3, %v1489_v28  ;;  %v1555_v11 = vadd.f32 %v1533_v22, %v1490_v15  ;;  %v1596_v58 = vadd.f32 %v1584_v53, %v1552_v30  ;;  %v1597_v2 = vadd.f32 %v1585_v43, %v1553_v42  ;;  %v1695_v3 = vld [vmem:[#allocation2 + $0x70] sm:$0x7] }
 0x2a5   : > { %v1625_v51 = vmul.f32 %v3763_v34, %v1609_v4  ;;  %v1626_v47 = vmul.f32 %v3738_v1, %v4101_v60  ;;  %v1627_v63 = vmul.f32 %v3763_v34, %v4103_v20  ;;  %v4151_v8 = vmul.f32 %v3738_v1, %v1610_v25  ;;  %v1694_v4 = vld [vmem:[#allocation2 + $0x30] sm:$0x7] }
 0x2a6   : > { %v1598_v50 = vadd.f32 %v1586_v41, %v1554_v6  ;;  %v1599_v62 = vadd.f32 %v1587_v23, %v1555_v11  ;;  %v4154_v28 = vmul.f32 %v3763_v34, %v1611_v21  ;;  %v1648_v9 = vrot.slane %v1624_v27, 1  ;;  %v1776_v27 = vld [vmem:[#allocation2 + $0x60] sm:$0xf0] }
 0x2a7   : > { %v1649_v15 = vrot.slane %v1626_v47, 1  ;;  %v1651_v30 = vrot.slane %v1625_v51, 1  ;;  %v1652_v42 = vrot.slane %v1627_v63, 1  ;;  %v4561_v53 = vrot.slane %v4151_v8, 1  ;;  %v1777_v51 = vld [vmem:[#allocation2 + $0x10] sm:$0xf0] }
 0x2a8   : > { %v4566_v43 = vrot.slane %v4154_v28, 1  ;;  %v1708_v1 = vmul.f32 %v3742_v18, %v1692_v56  ;;  %v1709_v25 = vmul.f32 %v3784_v40, %v1693_v5  ;;  %v1710_v41 = vmul.f32 %v3742_v18, %v4101_v60 }
 0x2a9   : > { %v1650_v34 = vsel %vm1029_vm8, %v1648_v9, %v1649_v15  ;;  %v1653_v22 = vsel %vm1029_vm8, %v1651_v30, %v1652_v42  ;;  %v1655_v23 = vsel %vm1029_vm8, %v1649_v15, %v4561_v53  ;;  %v1711_v21 = vmul.f32 %v3784_v40, %v4103_v20  ;;  %v1778_v30 = vld [vmem:[#allocation2 + $0x30] sm:$0xf] }
 0x2aa   : > { %v1657_v56 = vsel %vm1029_vm8, %v1652_v42, %v4566_v43  ;;  %v1680_v5 = vadd.f32 %v1650_v34, %v1596_v58  ;;  %v1681_v6 = vadd.f32 %v1653_v22, %v1597_v2  ;;  %v1682_v11 = vadd.f32 %v1655_v23, %v1598_v50  ;;  %v1779_v50 = vld [vmem:[#allocation2 + $0x70] sm:$0xf]  ;;  %v1860_v22 = vld [vmem:[#allocation2 + $0x60] sm:$0xe0]  ;;  %v1861_v23 = vld [vmem:[#allocation2 + $0x10] sm:$0xe0] }
 0x2ab   : > { %v1683_v47 = vadd.f32 %v1657_v56, %v1599_v62  ;;  %v4173_v63 = vmul.f32 %v3742_v18, %v1694_v4  ;;  %v4176_v9 = vmul.f32 %v3784_v40, %v1695_v3  ;;  %v1732_v15 = vrot.slane %v1708_v1, 2  ;;  %v1863_v43 = vld [vmem:[#allocation2 + $0x70] sm:$0x1f] }
 0x2ac   : > { %v1733_v53 = vrot.slane %v1710_v41, 2  ;;  %v1735_v29 = vrot.slane %v1709_v25, 2  ;;  %v1736_v35 = vrot.slane %v1711_v21, 2  ;;  %v1792_v46 = vmul.f32 %v3809_v31, %v1776_v27 }
 0x2ad   : > { %v4565_v42 = vrot.slane %v4173_v63, 2  ;;  %v4568_v58 = vrot.slane %v4176_v9, 2  ;;  %v1793_v62 = vmul.f32 %v3814_v57, %v1777_v51  ;;  %v1794_v18 = vmul.f32 %v3809_v31, %v4101_v60 }
 0x2ae   : > { %v1734_v40 = vsel %vm1114_vm3, %v1732_v15, %v1733_v53  ;;  %v1737_v2 = vsel %vm1114_vm3, %v1735_v29, %v1736_v35  ;;  %v1795_v4 = vmul.f32 %v3814_v57, %v4103_v20  ;;  %v4189_v3 = vmul.f32 %v3809_v31, %v1778_v30 }
 0x2af   : > { %v1739_v1 = vsel %vm1114_vm3, %v1733_v53, %v4565_v42  ;;  %v1741_v25 = vsel %vm1114_vm3, %v1736_v35, %v4568_v58  ;;  %v1764_v41 = vadd.f32 %v1734_v40, %v1680_v5  ;;  %v1765_v34 = vadd.f32 %v1737_v2, %v1681_v6  ;;  %v1862_v42 = vld [vmem:[#allocation2 + $0x30] sm:$0x1f] }
 0x2b0   : > { %v1766_v21 = vadd.f32 %v1739_v1, %v1682_v11  ;;  %v1767_v29 = vadd.f32 %v1741_v25, %v1683_v47  ;;  %v4198_v27 = vmul.f32 %v3814_v57, %v1779_v50  ;;  %v1816_v56 = vrot.slane %v1792_v46, 3  ;;  %v1944_v50 = vld [vmem:[#allocation2 + $0x60] sm:$0xc0] }
 0x2b1   : > { %v1817_v31 = vrot.slane %v1794_v18, 3  ;;  %v1819_v51 = vrot.slane %v1793_v62, 3  ;;  %v1820_v15 = vrot.slane %v1795_v4, 3  ;;  %v4567_v30 = vrot.slane %v4189_v3, 3  ;;  %v1945_v4 = vld [vmem:[#allocation2 + $0x10] sm:$0xc0] }
 0x2b2   : > { %v4570_v53 = vrot.slane %v4198_v27, 3  ;;  %v1876_v35 = vmul.f32 %v3838_v14, %v1860_v22  ;;  %v1877_v5 = vmul.f32 %v3842_v37, %v1861_v23  ;;  %v1878_v6 = vmul.f32 %v3838_v14, %v4101_v60 }
 0x2b3   : > { %v1818_v57 = vsel %vm1199_vm13, %v1816_v56, %v1817_v31  ;;  %v1821_v46 = vsel %vm1199_vm13, %v1819_v51, %v1820_v15  ;;  %v1823_v11 = vsel %vm1199_vm13, %v1817_v31, %v4567_v30  ;;  %v1879_v47 = vmul.f32 %v3842_v37, %v4103_v20  ;;  %v1946_v56 = vld [vmem:[#allocation2 + $0x30] sm:$0x3f] }
 0x2b4   : > { %v1825_v62 = vsel %vm1199_vm13, %v1820_v15, %v4570_v53  ;;  %v1848_v18 = vadd.f32 %v1818_v57, %v1764_v41  ;;  %v1849_v40 = vadd.f32 %v1821_v46, %v1765_v34  ;;  %v1850_v2 = vadd.f32 %v1823_v11, %v1766_v21  ;;  %v1947_v34 = vld [vmem:[#allocation2 + $0x70] sm:$0x3f]  ;;  %v2028_v46 = vld [vmem:[#allocation2 + $0x60] sm:$0x80]  ;;  %v2029_v11 = vld [vmem:[#allocation2 + $0x10] sm:$0x80] }
 0x2b5   : > { %v1851_v1 = vadd.f32 %v1825_v62, %v1767_v29  ;;  %v4217_v25 = vmul.f32 %v3838_v14, %v1862_v42  ;;  %v4220_v22 = vmul.f32 %v3842_v37, %v1863_v43  ;;  %v1900_v23 = vrot.slane %v1876_v35, 4  ;;  %v2031_v53 = vld [vmem:[#allocation2 + $0x70] sm:$0x7f] }
 0x2b6   : > { %v1901_v31 = vrot.slane %v1878_v6, 4  ;;  %v1903_v51 = vrot.slane %v1877_v5, 4  ;;  %v1904_v30 = vrot.slane %v1879_v47, 4  ;;  %v1960_v58 = vmul.f32 %v3849_v45, %v1944_v50 }
 0x2b7   : > { %v4569_v15 = vrot.slane %v4217_v25, 4  ;;  %v1908_v41 = vrot.slane %v4220_v22, 4  ;;  %v1961_v21 = vmul.f32 %v3873_v54, %v1945_v4  ;;  %v1962_v14 = vmul.f32 %v3849_v45, %v4101_v60 }
 0x2b8   : > { %v1902_v37 = vsel %vm1284_vm15, %v1900_v23, %v1901_v31  ;;  %v1905_v43 = vsel %vm1284_vm15, %v1903_v51, %v1904_v30  ;;  %v1963_v42 = vmul.f32 %v3873_v54, %v4103_v20  ;;  %v4233_v29 = vmul.f32 %v3849_v45, %v1946_v56 }
 0x2b9   : > { %v1907_v35 = vsel %vm1284_vm15, %v1901_v31, %v4569_v15  ;;  %v1909_v5 = vsel %vm1284_vm15, %v1904_v30, %v1908_v41  ;;  %v1932_v6 = vadd.f32 %v1902_v37, %v1848_v18  ;;  %v1933_v57 = vadd.f32 %v1905_v43, %v1849_v40  ;;  %v2030_v15 = vld [vmem:[#allocation2 + $0x30] sm:$0x7f] }
 0x2ba   : > { %v1934_v47 = vadd.f32 %v1907_v35, %v1850_v2  ;;  %v1935_v50 = vadd.f32 %v1909_v5, %v1851_v1  ;;  %v4242_v62 = vmul.f32 %v3873_v54, %v1947_v34  ;;  %v1984_v4 = vrot.slane %v1960_v58, 5  ;;  %v2112_v43 = vld [vmem:[#allocation2 + $0x30] sm:$0xff] }
 0x2bb   : > { %v1985_v45 = vrot.slane %v1962_v14, 5  ;;  %v1987_v23 = vrot.slane %v1961_v21, 5  ;;  %v1988_v56 = vrot.slane %v1963_v42, 5  ;;  %v4571_v51 = vrot.slane %v4233_v29, 5 }
 0x2bc   : > { %v1992_v31 = vrot.slane %v4242_v62, 5  ;;  %v2044_v30 = vmul.f32 %v3899_v33, %v2028_v46  ;;  %v2045_v18 = vmul.f32 %v3905_v26, %v2029_v11  ;;  %v2046_v40 = vmul.f32 %v3899_v33, %v4101_v60  ;;  %v2113_v11 = vld [vmem:[#allocation2 + $0x70] sm:$0xff] }
 0x2bd   : > { %v1986_v54 = vsel %vm1369_vm0, %v1984_v4, %v1985_v45  ;;  %v1989_v58 = vsel %vm1369_vm0, %v1987_v23, %v1988_v56  ;;  %v1991_v2 = vsel %vm1369_vm0, %v1985_v45, %v4571_v51  ;;  %v2047_v1 = vmul.f32 %v3905_v26, %v4103_v20 }
 0x2be   : > { %v1993_v34 = vsel %vm1369_vm0, %v1988_v56, %v1992_v31  ;;  %v2016_v21 = vadd.f32 %v1986_v54, %v1932_v6  ;;  %v2017_v14 = vadd.f32 %v1989_v58, %v1933_v57  ;;  %v2018_v37 = vadd.f32 %v1991_v2, %v1934_v47  ;;  %v955_v56 = vld [vmem:[#allocation2 + $0x18] sm:$0x1] }
 0x2bf   : > { %v2019_v42 = vadd.f32 %v1993_v34, %v1935_v50  ;;  %v4261_v35 = vmul.f32 %v3899_v33, %v2030_v15  ;;  %v4264_v5 = vmul.f32 %v3905_v26, %v2031_v53  ;;  %v2068_v46 = vrot.slane %v2044_v30, 6 }
 0x2c0   : > { %v2069_v4 = vrot.slane %v2046_v40, 6  ;;  %v2071_v45 = vrot.slane %v2045_v18, 6  ;;  %v2072_v23 = vrot.slane %v2047_v1, 6  ;;  %v2124_v51 = vmul.f32 %v3909_v10, %v4101_v60  ;;  %v956_v60 = vld [vmem:[#allocation2 + $0x8] sm:$0x1] }
 0x2c1   : > { %v2074_v6 = vrot.slane %v4261_v35, 6  ;;  %v2076_v57 = vrot.slane %v4264_v5, 6  ;;  %v2125_v47 = vmul.f32 %v3932_v61, %v4103_v20  ;;  %v4273_v33 = vmul.f32 %v3909_v10, %v2112_v43  ;;  %v949_v43 = vld [vmem:[#allocation2 + $0x48] sm:$0x1] }
 0x2c2   : > { %v2070_v26 = vsel %vm1454_vm4, %v2068_v46, %v2069_v4  ;;  %v2073_v53 = vsel %vm1454_vm4, %v2071_v45, %v2072_v23  ;;  %v4278_v15 = vmul.f32 %v3932_v61, %v2113_v11  ;;  %v2140_v50 = vrot.slane %v2124_v51, 7  ;;  %v950_v46 = vld [vmem:[#allocation2 + $0x28] sm:$0x1] }
 0x2c3   : > { %v2075_v30 = vsel %vm1454_vm4, %v2069_v4, %v2074_v6  ;;  %v2077_v20 = vsel %vm1454_vm4, %v2072_v23, %v2076_v57  ;;  %v2100_v10 = vadd.f32 %v2070_v26, %v2016_v21  ;;  %v2101_v18 = vadd.f32 %v2073_v53, %v2017_v14 }
 0x2c4   : > { %v2102_v40 = vadd.f32 %v2075_v30, %v2018_v37  ;;  %v2103_v54 = vadd.f32 %v2077_v20, %v2019_v42  ;;  %v2141_v58 = vrot.slane %v2125_v47, 7  ;;  %v2142_v2 = vrot.slane %v4273_v33, 7  ;;  %v4618_v20 = vld [vmem:[#allocation13_spill] sm:$0xff] }
 0x2c5   : > { %v2144_v61 = vrot.slane %v4278_v15, 7  ;;  %v2164_v51 = vadd.f32 %v2140_v50, %v2100_v10  ;;  %v975_v1 = vmul.f32 %v3436_v39, %v955_v56  ;;  %v976_v34 = vmul.f32 %v3499_v24, %v956_v60 }
 0x2c6   : > { %v2143_v11 = vsel %vm1527_vm9, %v2140_v50, %v2142_v2  ;;  %v2165_v21 = vadd.f32 %v2141_v58, %v2101_v18  ;;  %v4614_v42 = vrot.slane %v3475_v16, 1  ;;  %v4615_v45 = vrot.slane %v3518_v59, 1  ;;  %v4616_v50 = vld [vmem:[#allocation12_spill] sm:$0xff] }
 0x2c7   : > { %v2145_v14 = vsel %vm1527_vm9, %v2141_v58, %v2144_v61  ;;  %v2166_v37 = vadd.f32 %v2143_v11, %v2102_v40  ;;  %v969_v53 = vmul.f32 %v3436_v39, %v949_v43  ;;  %v970_v56 = vmul.f32 %v3499_v24, %v950_v46  ;;  %v4624_v24 = vld [vmem:[#allocation15_spill] sm:$0xff] }
 0x2c8   : > { %v1072_v4 = vadd.f32 %v4614_v42, %v975_v1  ;;  %v1073_v23 = vadd.f32 %v4615_v45, %v976_v34  ;;  %v2167_v47 = vadd.f32 %v2145_v14, %v2103_v54  ;;  %v4300_v26 = vadd.f32 %v2165_v21, %v2164_v51  ;;  %v4622_v1 = vld [vmem:[#allocation14_spill] sm:$0xff]  ;;  %v4626_v21 = vld [vmem:[#allocation40_spill] sm:$0xff] }
 0x2c9   : > { %v4617_v60 = vrot.slane %v4616_v50, 2  ;;  %v4619_v10 = vrot.slane %v4618_v20, 2  ;;  %v4620_v59 = vrot.slane %v3981_v49, 1  ;;  %v4621_v54 = vrot.slane %v3986_v52, 1  ;;  %v4629_v45 = vld [vmem:[#allocation16_spill] sm:$0xff] }
 0x2ca   : > { %v4308_v40 = vadd.f32 %v2167_v47, %v2166_v37  ;;  %v2188_v16 = vrot.slane %v4300_v26, 1  ;;  %v4623_v39 = vrot.slane %v4622_v1, 3  ;;  %v4625_v43 = vrot.slane %v4624_v24, 3  ;;  %v4631_v47 = vld [vmem:[#allocation17_spill] sm:$0xff]  ;;  %v1574_v50 = vld [vmem:[#allocation2 + $0x78] sm:$0x1] }
 0x2cb   : > { %v1157_v30 = vadd.f32 %v4617_v60, %v1072_v4  ;;  %v1158_v18 = vadd.f32 %v4619_v10, %v1073_v23  ;;  %v1066_v58 = vadd.f32 %v4620_v59, %v969_v53  ;;  %v1067_v51 = vadd.f32 %v4621_v54, %v970_v56  ;;  %v1575_v60 = vld [vmem:[#allocation2 + $0x58] sm:$0x1]  ;;  %v4634_v10 = vld [vmem:[#allocation41_spill] sm:$0xff] }
 0x2cc   : > { %v2189_v11 = vrot.slane %v4308_v40, 1  ;;  %v4627_v14 = vrot.slane %v4626_v21, 2  ;;  %v4628_v42 = vrot.slane %v4014_v17, 2  ;;  %v4630_v49 = vrot.slane %v4629_v45, 4  ;;  %v4636_v17 = vld [vmem:[#allocation18_spill] sm:$0xff] }
 0x2cd   : > { %v1242_v34 = vadd.f32 %v4623_v39, %v1157_v30  ;;  %v1243_v46 = vadd.f32 %v4625_v43, %v1158_v18  ;;  %v4632_v52 = vrot.slane %v4631_v47, 4  ;;  %v4633_v30 = vrot.slane %v4030_v55, 3 }
 0x2ce   : > { %v1151_v37 = vadd.f32 %v4627_v14, %v1066_v58  ;;  %v1152_v4 = vadd.f32 %v4628_v42, %v1067_v51  ;;  %v2190_v56 = vsel %vm1029_vm8, %v2188_v16, %v2189_v11  ;;  %v4635_v18 = vrot.slane %v4634_v10, 3  ;;  %v4638_v51 = vld [vmem:[#allocation19_spill] sm:$0xff]  ;;  %v4644_v14 = vld [vmem:[#allocation21_spill] sm:$0xff] }
 0x2cf   : > { %v1327_v23 = vadd.f32 %v4630_v49, %v1242_v34  ;;  %v1328_v53 = vadd.f32 %v4632_v52, %v1243_v46  ;;  %2202 = vrot.lane.b32.xlu0 %v2190_v56, %s2804_s19  ;;  %v4637_v58 = vrot.slane %v4636_v17, 5  ;;  %v4639_v1 = vrot.slane %v4638_v51, 5  ;;  %v4642_v46 = vld [vmem:[#allocation20_spill] sm:$0xff]  ;;  %v1568_v49 = vld [vmem:[#allocation2 + $0x30] sm:$0x1] }
 0x2d0   : > { %v1236_v20 = vadd.f32 %v4633_v30, %v1151_v37  ;;  %v1237_v59 = vadd.f32 %v4635_v18, %v1152_v4  ;;  %v4640_v34 = vrot.slane %v4055_v19, 4  ;;  %v4641_v16 = vrot.slane %v4058_v0, 4  ;;  %v4648_v0 = vld [vmem:[#allocation22_spill] sm:$0xff] }
 0x2d1   : > { %v1412_v54 = vadd.f32 %v4637_v58, %v1327_v23  ;;  %v1413_v39 = vadd.f32 %v4639_v1, %v1328_v53  ;;  %v4643_v55 = vrot.slane %v4642_v46, 6  ;;  %v4645_v37 = vrot.slane %v4644_v14, 6  ;;  %v1569_v23 = vld [vmem:[#allocation2 + $0x70] sm:$0x1] }
 0x2d2   : > { %v1321_v24 = vadd.f32 %v4640_v34, %v1236_v20  ;;  %v1322_v43 = vadd.f32 %v4641_v16, %v1237_v59  ;;  %v1594_v4 = vmul.f32 %v3734_v7, %v1574_v50  ;;  %v1595_v45 = vmul.f32 %v3756_v12, %v1575_v60  ;;  %v4650_v20 = vld [vmem:[#allocation23_spill] sm:$0xff]  ;;  %v4660_v14 = vld [vmem:[#allocation26_spill] sm:$0xff] }
 0x2d3   : > { %v1497_v21 = vadd.f32 %v4643_v55, %v1412_v54  ;;  %v1498_v42 = vadd.f32 %v4645_v37, %v1413_v39  ;;  %v4646_v47 = vrot.slane %v4074_v36, 5  ;;  %v4647_v19 = vrot.slane %v4080_v38, 5 }
 0x2d4   : > { %v4649_v56 = vrot.slane %v4648_v0, 7  ;;  %v4651_v10 = vrot.slane %v4650_v20, 7  ;;  %v4652_v59 = vrot.slane %v4099_v44, 6  ;;  %v4653_v50 = vrot.slane %v4106_v32, 6  ;;  %v4658_v44 = vld [vmem:[#allocation25_spill] sm:$0xff] }
 0x2d5   : > { %v1406_v52 = vadd.f32 %v4646_v47, %v1321_v24  ;;  %v1407_v53 = vadd.f32 %v4647_v19, %v1322_v43  ;;  %v1588_v58 = vmul.f32 %v3734_v7, %v1568_v49  ;;  %v1589_v36 = vmul.f32 %v3756_v12, %v1569_v23  ;;  %v4656_v24 = vld [vmem:[#allocation24_spill] sm:$0xff]  ;;  %v4662_v12 = vld [vmem:[#allocation27_spill] sm:$0xff]  ;;  %v4668_v19 = vld [vmem:[#allocation29_spill] sm:$0xff] }
 0x2d6   : > { %v1562_v30 = vadd.f32 %v4649_v56, %v1497_v21  ;;  %v1563_v18 = vadd.f32 %v4651_v10, %v1498_v42  ;;  %v4654_v38 = vrot.slane %v4117_v48, 7  ;;  %v4655_v39 = vrot.slane %v4121_v13, 7  ;;  %v4666_v23 = vld [vmem:[#allocation28_spill] sm:$0xff] }
 0x2d7   : > { %v1491_v17 = vadd.f32 %v4652_v59, %v1406_v52  ;;  %v1492_v60 = vadd.f32 %v4653_v50, %v1407_v53  ;;  %v4657_v16 = vrot.slane %v4656_v24, 1  ;;  %v4659_v46 = vrot.slane %v4658_v44, 1 }
 0x2d8   : > { %v1606_v54 = vadd.f32 %v1594_v4, %v1562_v30  ;;  %v1607_v51 = vadd.f32 %v1595_v45, %v1563_v18  ;;  %v4661_v7 = vrot.slane %v4660_v14, 2  ;;  %v4663_v42 = vrot.slane %v4662_v12, 2  ;;  %v4672_v18 = vld [vmem:[#allocation30_spill] sm:$0xff] }
 0x2d9   : > { %v1556_v1 = vadd.f32 %v4654_v38, %v1491_v17  ;;  %v1557_v34 = vadd.f32 %v4655_v39, %v1492_v60  ;;  %v4664_v48 = vrot.slane %v4151_v8, 1  ;;  %v4665_v13 = vrot.slane %v4154_v28, 1  ;;  %v4674_v8 = vld [vmem:[#allocation31_spill] sm:$0xff] }
 0x2da   : > { %v1690_v43 = vadd.f32 %v4657_v16, %v1606_v54  ;;  %v1691_v55 = vadd.f32 %v4659_v46, %v1607_v51  ;;  %v4667_v47 = vrot.slane %v4666_v23, 3  ;;  %v4669_v53 = vrot.slane %v4668_v19, 3  ;;  %v4678_v51 = vld [vmem:[#allocation32_spill] sm:$0xff] }
 0x2db   : > { %v1600_v32 = vadd.f32 %v1588_v58, %v1556_v1  ;;  %v1601_v21 = vadd.f32 %v1589_v36, %v1557_v34  ;;  %v4670_v56 = vrot.slane %v4173_v63, 2  ;;  %v4671_v20 = vrot.slane %v4176_v9, 2  ;;  %v4680_v63 = vld [vmem:[#allocation33_spill] sm:$0xff] }
 0x2dc   : > { %v1774_v37 = vadd.f32 %v4661_v7, %v1690_v43  ;;  %v1775_v4 = vadd.f32 %v4663_v42, %v1691_v55  ;;  %v4673_v59 = vrot.slane %v4672_v18, 4  ;;  %v4675_v50 = vrot.slane %v4674_v8, 4  ;;  %v4683_v43 = vld [vmem:[#allocation34_spill] sm:$0xff]  ;;  %v4688_v7 = vld [vmem:[#allocation36_spill] sm:$0xff] }
 0x2dd   : > { %v1684_v45 = vadd.f32 %v4664_v48, %v1600_v32  ;;  %v1685_v49 = vadd.f32 %v4665_v13, %v1601_v21  ;;  %v4676_v28 = vrot.slane %v4189_v3, 3  ;;  %v4677_v36 = vrot.slane %v4198_v27, 3  ;;  %v4685_v3 = vld [vmem:[#allocation35_spill] sm:$0xff] }
 0x2de   : > { %v1858_v52 = vadd.f32 %v4667_v47, %v1774_v37  ;;  %v1859_v0 = vadd.f32 %v4669_v53, %v1775_v4  ;;  %v4679_v38 = vrot.slane %v4678_v51, 5  ;;  %v4681_v39 = vrot.slane %v4680_v63, 5  ;;  %v4692_v13 = vld [vmem:[#allocation39_spill] sm:$0xff] }
 0x2df   : > { %v1768_v30 = vadd.f32 %v4670_v56, %v1684_v45  ;;  %v1769_v10 = vadd.f32 %v4671_v20, %v1685_v49  ;;  %v4682_v9 = vrot.slane %v4217_v25, 4  ;;  %v4684_v44 = vrot.slane %v4683_v43, 6  ;;  %v4690_v25 = vld [vmem:[#allocation37_spill] sm:$0xff] }
 0x2e0   : > { %v1942_v17 = vadd.f32 %v4673_v59, %v1858_v52  ;;  %v1943_v60 = vadd.f32 %v4675_v50, %v1859_v0  ;;  %v4686_v55 = vrot.slane %v4685_v3, 6  ;;  %v4687_v27 = vrot.slane %v4233_v29, 5  ;;  %v4694_v0 = vld [vmem:[#allocation38_spill] sm:$0xff] }
 0x2e1   : > { %v1852_v58 = vadd.f32 %v4676_v28, %v1768_v30  ;;  %v1853_v54 = vadd.f32 %v4677_v36, %v1769_v10  ;;  %v4689_v37 = vrot.slane %v4688_v7, 7  ;;  %v4691_v42 = vrot.slane %v4690_v25, 7 }
 0x2e2   : > { %v2026_v1 = vadd.f32 %v4679_v38, %v1942_v17  ;;  %v2027_v34 = vadd.f32 %v4681_v39, %v1943_v60  ;;  %v4693_v49 = vrot.slane %v4692_v13, 1  ;;  %vm2336_vm3 = vcmask 122880  }
 0x2e3   : > { %v1936_v24 = vadd.f32 %v4682_v9, %v1852_v58  ;;  %v1937_v16 = vadd.f32 %v1908_v41, %v1853_v54  ;;  %vm2334_vm11 = vcmask 130048  }
 0x2e4   : > { %v2110_v46 = vadd.f32 %v4684_v44, %v2026_v1  ;;  %v2111_v32 = vadd.f32 %v4686_v55, %v2027_v34 }
 0x2e5   : > { %v2020_v21 = vadd.f32 %v4687_v27, %v1936_v24  ;;  %v2021_v14 = vadd.f32 %v1992_v31, %v1937_v16 }
 0x2e6   : > { %v2174_v12 = vadd.f32 %v4689_v37, %v2110_v46  ;;  %v2175_v4 = vadd.f32 %v4691_v42, %v2111_v32 }
 0x2e7   : > { %v2104_v22 = vadd.f32 %v2074_v6, %v2020_v21  ;;  %v2105_v41 = vadd.f32 %v2076_v57, %v2021_v14 }
 0x2e8   : > { %v2181_v48 = vadd.f32 %v2175_v4, %v2174_v12 }
 0x2e9   : > { %v2168_v29 = vadd.f32 %v2142_v2, %v2104_v22  ;;  %v2169_v62 = vadd.f32 %v2144_v61, %v2105_v41 }
 0x2ea   : > { %v2196_v31 = vrot.slane %v2181_v48, 1 }
 0x2eb   : > { %v2178_v45 = vadd.f32 %v2169_v62, %v2168_v29 }
 0x2ec   : > { %v2197_v23 = vsel %vm1029_vm8, %v4693_v49, %v2196_v31 }
 0x2ed   : > { %2208 = vrot.lane.b32.xlu1 %v2197_v23, %s2804_s19  ;;  %v2191_v35 = vrot.slane %v2178_v45, 1 }
 0x2ef   : > { %v2192_v5 = vsel %vm1029_vm8, %v2189_v11, %v2191_v35 }
 0x2f0   : > { %2204 = vrot.lane.b32.xlu0 %v2192_v5, %s2804_s19 }
 0x2f9   : > { %v2207_v6 = vpop.permute.xlu1 %2206 }
 0x2fa   : > { %v2217_v33 = vrot.slane %v2207_v6, 7 }
 0x2fc   : > { %v2229_v56 = vadd.f32 %v2217_v33, %v4694_v0 }
 0x2fe   : > { %v2243_v50 = vrot.slane %v2229_v56, 1 }
 0x341   : > { %v2203_v57 = vpop.permute.xlu0 %2202 }
 0x342   : > { %v2214_v2 = vrot.slane %v2203_v57, 7 }
 0x344   : > { %v2226_v53 = vadd.f32 %v2214_v2, %v4300_v26 }
 0x346   : > { %v2238_v17 = vrot.slane %v2226_v53, 1 }
 0x35f   : > { %v2209_v15 = vpop.permute.xlu1 %2208 }
 0x360   : > { %v2218_v61 = vrot.slane %v2209_v15, 7 }
 0x362   : > { %v2205_v47 = vpop.permute.xlu0 %2204  ;;  %v2219_v52 = vsel %vm1527_vm9, %v2217_v33, %v2218_v61  ;;  %v2231_v10 = vadd.f32 %v2218_v61, %v2181_v48 }
 0x363   : > { %v2215_v19 = vrot.slane %v2205_v47, 7  ;;  %v2230_v11 = vadd.f32 %v2219_v52, %v4692_v13 }
 0x364   : > { %v2246_v60 = vrot.slane %v2231_v10, 1 }
 0x365   : > { %v2216_v30 = vsel %vm1527_vm9, %v2214_v2, %v2215_v19  ;;  %v2228_v20 = vadd.f32 %v2215_v19, %v2178_v45  ;;  %v2244_v26 = vrot.slane %v2230_v11, 1 }
 0x366   : > { %v2227_v18 = vadd.f32 %v2216_v30, %v4308_v40 }
 0x367   : > { %v2241_v59 = vrot.slane %v2228_v20, 1  ;;  %v2247_v36 = vsel %vm1029_vm8, %v2244_v26, %v2246_v60  ;;  %v2245_v54 = vsel %vm1029_vm8, %v2243_v50, %v2244_v26 }
 0x368   : > { %v2239_v8 = vrot.slane %v2227_v18, 1 }
 0x36a   : > { %v2242_v28 = vsel %vm1029_vm8, %v2239_v8, %v2241_v59  ;;  %v2240_v58 = vsel %vm1029_vm8, %v2238_v17, %v2239_v8 }
 0x36b   : > { %2254 = vrot.lane.b32.xlu1 %v2242_v28, %s2805_s5  ;;  %2252 = vrot.lane.b32.xlu0 %v2240_v58, %s2805_s5 }
 0x36f   : > { %2258 = vrot.lane.b32.xlu1 %v2247_v36, %s2805_s5  ;;  %2256 = vrot.lane.b32.xlu0 %v2245_v54, %s2805_s5 }
 0x3dd   : > { %v2255_v40 = vpop.permute.xlu1 %2254  ;;  %v2253_v51 = vpop.permute.xlu0 %2252 }
 0x3de   : > { %v2265_v38 = vrot.slane %v2255_v40, 7  ;;  %v2264_v1 = vrot.slane %v2253_v51, 7 }
 0x3e0   : > { %v2278_v63 = vadd.f32 %v2265_v38, %v2228_v20  ;;  %v2266_v39 = vsel %vm1527_vm9, %v2264_v1, %v2265_v38  ;;  %v2276_v34 = vadd.f32 %v2264_v1, %v2226_v53 }
 0x3e1   : > { %v2277_v9 = vadd.f32 %v2266_v39, %v2227_v18  ;;  %v2259_v24 = vpop.permute.xlu1 %2258  ;;  %v2257_v16 = vpop.permute.xlu0 %2256 }
 0x3e2   : > { %v2291_v43 = vrot.slane %v2278_v63, 1  ;;  %v2288_v44 = vrot.slane %v2276_v34, 1  ;;  %v2268_v46 = vrot.slane %v2259_v24, 7  ;;  %v2267_v3 = vrot.slane %v2257_v16, 7 }
 0x3e3   : > { %v2289_v55 = vrot.slane %v2277_v9, 1 }
 0x3e4   : > { %v2281_v32 = vadd.f32 %v2268_v46, %v2231_v10  ;;  %v2269_v27 = vsel %vm1527_vm9, %v2267_v3, %v2268_v46  ;;  %v2279_v21 = vadd.f32 %v2267_v3, %v2229_v56 }
 0x3e5   : > { %v2280_v14 = vadd.f32 %v2269_v27, %v2230_v11  ;;  %v2292_v7 = vsel %vm1029_vm8, %v2289_v55, %v2291_v43  ;;  %v2290_v37 = vsel %vm1029_vm8, %v2288_v44, %v2289_v55 }
 0x3e6   : > { %v2296_v12 = vrot.slane %v2281_v32, 1  ;;  %v2293_v25 = vrot.slane %v2279_v21, 1  ;;  %2304 = vrot.lane.b32.xlu1 %v2292_v7, %s2806_s26  ;;  %2302 = vrot.lane.b32.xlu0 %v2290_v37, %s2806_s26 }
 0x3e7   : > { %v2294_v42 = vrot.slane %v2280_v14, 1 }
 0x3e9   : > { %v2297_v4 = vsel %vm1029_vm8, %v2294_v42, %v2296_v12  ;;  %v2295_v22 = vsel %vm1029_vm8, %v2293_v25, %v2294_v42 }
 0x3ea   : > { %2308 = vrot.lane.b32.xlu1 %v2297_v4, %s2806_s26  ;;  %2306 = vrot.lane.b32.xlu0 %v2295_v22, %s2806_s26 }
 0x458   : > { %v2305_v41 = vpop.permute.xlu1 %2304  ;;  %v2303_v48 = vpop.permute.xlu0 %2302 }
 0x459   : > { %v2315_v29 = vrot.slane %v2305_v41, 7  ;;  %v2314_v62 = vrot.slane %v2303_v48, 7 }
 0x45b   : > { %v2328_v31 = vadd.f32 %v2315_v29, %v2278_v63  ;;  %v2316_v45 = vsel %vm1527_vm9, %v2314_v62, %v2315_v29  ;;  %v2326_v13 = vadd.f32 %v2314_v62, %v2276_v34 }
 0x45c   : > { %v2327_v49 = vadd.f32 %v2316_v45, %v2277_v9  ;;  %v2309_v23 = vpop.permute.xlu1 %2308  ;;  %v2307_v35 = vpop.permute.xlu0 %2306 }
 0x45d   : > { %2337 = vst.msk [vmem:[%s2940_s6 + $0xf] sm:$0x1] %vm2336_vm3, %v2328_v31  ;;  %v2318_v5 = vrot.slane %v2309_v23, 7  ;;  %v2317_v6 = vrot.slane %v2307_v35, 7 }
 0x45e   : > { %2333 = vst.msk [vmem:[%s2940_s6 - $0x1] sm:$0xfe] %vm2332_vm10, %v2326_v13 }
 0x45f   : > { %2335 = vst.msk [vmem:[%s2940_s6 + $0x7] sm:$0xff] %vm2334_vm11, %v2327_v49  ;;  %v2331_v57 = vadd.f32 %v2318_v5, %v2281_v32  ;;  %v2319_v33 = vsel %vm1527_vm9, %v2317_v6, %v2318_v5  ;;  %v2329_v15 = vadd.f32 %v2317_v6, %v2279_v21 }
 0x460   : > { %v2330_v2 = vadd.f32 %v2319_v33, %v2280_v14 }
 0x461   : > { %2340 = vst.msk [vmem:[%s2940_s6 + $0x1f] sm:$0x1] %vm2336_vm3, %v2331_v57 }
 0x462   : > { %2338 = vst.msk [vmem:[%s2940_s6 + $0xf] sm:$0xfe] %vm2332_vm10, %v2329_v15 }
 0x463   : > { %2339 = vst.msk [vmem:[%s2940_s6 + $0x17] sm:$0xff] %vm2334_vm11, %v2330_v2 }
 0x464 PF: > { %s23_s23 = sadd.s32 1, %s2773_s23   ;;  %s4695_s17 = smov %s2749_s18 }
 0x465   : > { %p20_p9 = scmp.ge.s32.totalorder %s23_s23, 14   ;;  %s4696_s18 = smov %s2753_s0 }
 0x466   : > { %s4697_s0 = smov %s2917_s30  ;;  %s4698_s19 = smov %s2765_s21 }
 0x467   : > { %s4699_s20 = smov %s2769_s22  ;;  %s4700_s21 = smov %s4703_s8 }
 0x468   : > { %s4701_s22 = smov %s4707_s9  ;;  %22 = sbr.rel (!%p20_p9) target bundleno = 21 (0x15), region = 77 }
 0x46d   :  { %2373 = vsyncpa [#allocation6], 1 }
 0x46e   :  { %2375 = vsyncpa [#allocation6 + $0x1], 1 }
 0x46f   :  { %2376 = vsyncpa [#allocation8], 1 }
 0x470   :  { %2378 = vsyncpa [#allocation8 + $0x1], 1 }

</bundles_post_ra>
